<compile_context>
chip_gen: v7x
topology: tpu7x:2x2x1
jax: 0.10.0
libtpu: 0.0.40
codegen_flags: <defaults>
</compile_context>

<pallas_src>
import functools

import numpy as np
import jax
import jax.numpy as jnp
from jax.experimental import pallas as pl
from jax.experimental.pallas import tpu as pltpu


def _out_width(w, k, s):
    return (w - k) // s + 1


# -----------------------------------------------------------------------------
# The single fused Pallas kernel: whole QNetwork forward on VMEM-resident data.
# -----------------------------------------------------------------------------
def _qnet_fused_kernel(x_ref,
                       w1_ref, r1_ref, b1_ref,
                       w2_ref, r2_ref, b2_ref,
                       w3_ref, s3_ref, b3_ref,
                       w4_ref, b4_ref,
                       o_ref):
    """Each conv / grouped-fc layer is   relu( sum_i (G_i @ x) @ W_i + b )
    with G_i constant 0/1 row-gather matrices and W_i pre-packed weight slabs.
    Both matmuls run on the MXU in bf16 with f32 accumulation; bias + ReLU
    epilogue stays f32."""
    bf16 = jnp.bfloat16

    def mm(a, b):
        return jnp.dot(a, b, preferred_element_type=jnp.float32)

    def gathered_layer(x_f32, w_ref, g_ref, b_ref):
        xb = x_f32.astype(bf16)                       # one cast per layer
        acc = None
        for i in range(w_ref.shape[0]):               # static unroll (<= 8 steps)
            rows = mm(g_ref[i], xb).astype(bf16)      # 0/1 gather -> exact in bf16
            y = mm(rows, w_ref[i])                    # MXU, f32 accumulate
            acc = y if acc is None else acc + y
        return jnp.maximum(acc + b_ref[...], 0.0)     # f32 epilogue

    a1 = gathered_layer(x_ref[...], w1_ref, r1_ref, b1_ref)   # conv1: (N*OH1, OW1*C1)
    a2 = gathered_layer(a1, w2_ref, r2_ref, b2_ref)           # conv2: (N*OH2, OW2*C2)
    a3 = gathered_layer(a2, w3_ref, s3_ref, b3_ref)           # fc1  : (N, F)
    q = mm(a3.astype(bf16), w4_ref[...]) + b4_ref[...]        # fc2  : (N, A)
    o_ref[...] = jnp.maximum(q, 0.0)                          # spec ReLUs the Q-values


# -----------------------------------------------------------------------------
# One-time weight packing (init-time, plain numpy -> device arrays)
# -----------------------------------------------------------------------------
def _conv_row_toeplitz(w_oihw, stride, in_w):
    """OIHW conv weight -> per-kernel-row Toeplitz slabs (KH, in_w*Cin, out_w*Cout).

    slab[i, w*Cin + c, ow*Cout + co] = w[co, c, i, w - stride*ow]   (0 elsewhere)
    """
    cout, cin, kh, kw = w_oihw.shape
    out_w = _out_width(in_w, kw, stride)
    t = np.zeros((kh, in_w * cin, out_w * cout), np.float32)
    for i in range(kh):
        for ow in range(out_w):
            for j in range(kw):
                col = stride * ow + j
                t[i, col * cin:(col + 1) * cin, ow * cout:(ow + 1) * cout] = \
                    w_oihw[:, :, i, j].T
    return t


def _fc1_row_groups(w_fc, oh, ow, c):
    """(F, C*OH*OW) PyTorch fc1 weight -> (OH, OW*C, F).

    Bakes the NCHW flatten order into the weight so the kernel consumes the
    NHWC-layout conv2 activation directly."""
    f = w_fc.shape[0]
    w4d = w_fc.reshape(f, c, oh, ow)                       # [f, c, h, w]
    return np.transpose(w4d, (2, 3, 1, 0)).reshape(oh, ow * c, f)


def _row_gather(n, rows_in, rows_out, stride, kh):
    """0/1 matrices (KH, n*rows_out, n*rows_in) selecting input row stride*oh + i."""
    g = np.zeros((kh, n * rows_out, n * rows_in), np.float32)
    for i in range(kh):
        for b in range(n):
            for oh in range(rows_out):
                g[i, b * rows_out + oh, b * rows_in + stride * oh + i] = 1.0
    return g


def _fc1_gather(n, oh):
    """0/1 matrices (OH, n, n*OH) selecting per-sample row `oh` of conv2's output."""
    s = np.zeros((oh, n, n * oh), np.float32)
    for h in range(oh):
        for b in range(n):
            s[h, b, b * oh + h] = 1.0
    return s


def pack_qnetwork_params(params, input_width, stride_sizes):
    """Repack PyTorch-layout params into kernel-ready slabs.  Done once at init;
    the forward performs zero weight-layout work."""
    s1, s2 = stride_sizes
    get = lambda k: np.asarray(params[k], np.float32)
    w1, b1 = get("l1_w"), get("l1_b")
    w2, b2 = get("l2_w"), get("l2_b")
    w3, b3 = get("l3_w"), get("l3_b")
    w4, b4 = get("l4_w"), get("l4_b")

    c2 = w2.shape[0]
    k1, k2 = w1.shape[2], w2.shape[2]
    ow1 = _out_width(input_width, k1, s1)
    ow2 = _out_width(ow1, k2, s2)

    return {
        "w1row": jnp.asarray(_conv_row_toeplitz(w1, s1, input_width), jnp.bfloat16),
        "b1t":   jnp.asarray(np.tile(b1, ow1)[None, :], jnp.float32),
        "w2row": jnp.asarray(_conv_row_toeplitz(w2, s2, ow1), jnp.bfloat16),
        "b2t":   jnp.asarray(np.tile(b2, ow2)[None, :], jnp.float32),
        "w3g":   jnp.asarray(_fc1_row_groups(w3, ow2, ow2, c2), jnp.bfloat16),
        "b3":    jnp.asarray(b3[None, :], jnp.float32),
        "w4t":   jnp.asarray(w4.T, jnp.bfloat16),
        "b4":    jnp.asarray(b4[None, :], jnp.float32),
    }


# -----------------------------------------------------------------------------
# Forward: one layout op + one pallas_call
# -----------------------------------------------------------------------------
@functools.partial(jax.jit, static_argnums=(2, 3))
def qnetwork_forward(packed, observation, stride1, stride2):
    n, cin, h, w = observation.shape
    assert h == w, "square observations expected"
    k1 = packed["w1row"].shape[0]
    k2 = packed["w2row"].shape[0]
    ow1 = _out_width(w, k1, stride1)
    ow2 = _out_width(ow1, k2, stride2)
    n_actions = packed["w4t"].shape[1]

    # Single layout op at entry: NCHW -> NHWC, viewed as (N*H, W*Cin) so channels
    # sit in the lane axis.  Everything downstream happens inside one kernel.
    x2 = jnp.transpose(observation, (0, 2, 3, 1)).reshape(n * h, w * cin)

    # Constant 0/1 gather matrices (trace-time numpy -> baked program constants).
    r1 = jnp.asarray(_row_gather(n, h, ow1, stride1, k1), jnp.bfloat16)
    r2 = jnp.asarray(_row_gather(n, ow1, ow2, stride2, k2), jnp.bfloat16)
    s3 = jnp.asarray(_fc1_gather(n, ow2), jnp.bfloat16)

    vmem = pl.BlockSpec(memory_space=pltpu.MemorySpace.VMEM)
    # For large batches: add a grid over batch blocks of x2 / the output and mark
    # it "parallel" (dimension_semantics) so v7x's two TensorCores split the work.
    return pl.pallas_call(
        _qnet_fused_kernel,
        out_shape=jax.ShapeDtypeStruct((n, n_actions), jnp.float32),
        in_specs=[vmem] * 12,
        out_specs=vmem,
    )(x2,
      packed["w1row"], r1, packed["b1t"],
      packed["w2row"], r2, packed["b2t"],
      packed["w3g"], s3, packed["b3"],
      packed["w4t"], packed["b4"])


# -----------------------------------------------------------------------------
# Parameter init (PyTorch layout / init rules) + pure-JAX reference
# -----------------------------------------------------------------------------
def init_qnetwork_params(key, n_actions, input_width=36,
                         channel_sizes=(4, 16, 32), kernel_sizes=(8, 4),
                         stride_sizes=(4, 2), fully_connected_sizes=(256,)):
    ow1 = _out_width(input_width, kernel_sizes[0], stride_sizes[0])
    ow2 = _out_width(ow1, kernel_sizes[1], stride_sizes[1])
    flat = channel_sizes[2] * ow2 * ow2
    fc = fully_connected_sizes[0]
    k = jax.random.split(key, 6)

    def uniform(kk, shape, limit):
        return jax.random.uniform(kk, shape, jnp.float32, -limit, limit)

    def xavier(kk, fan_in, fan_out, shape):
        return uniform(kk, shape, (6.0 / (fan_in + fan_out)) ** 0.5)

    fan1 = channel_sizes[0] * kernel_sizes[0] ** 2
    fan2 = channel_sizes[1] * kernel_sizes[1] ** 2
    params = {
        # conv layers: PyTorch default init (uniform +-1/sqrt(fan_in), weight & bias)
        "l1_w": uniform(k[0], (channel_sizes[1], channel_sizes[0],
                               kernel_sizes[0], kernel_sizes[0]), fan1 ** -0.5),
        "l1_b": uniform(k[1], (channel_sizes[1],), fan1 ** -0.5),
        "l2_w": uniform(k[2], (channel_sizes[2], channel_sizes[1],
                               kernel_sizes[1], kernel_sizes[1]), fan2 ** -0.5),
        "l2_b": uniform(k[3], (channel_sizes[2],), fan2 ** -0.5),
        # linear layers: weights_init_ -> xavier_uniform weight, zero bias
        "l3_w": xavier(k[4], flat, fc, (fc, flat)),
        "l3_b": jnp.zeros((fc,), jnp.float32),
        "l4_w": xavier(k[5], fc, n_actions, (n_actions, fc)),
        "l4_b": jnp.zeros((n_actions,), jnp.float32),
    }
    cfg = dict(input_width=input_width, stride_sizes=tuple(stride_sizes))
    return params, cfg


def _ref_forward(params, obs, stride1, stride2):
    """Pure-JAX f32 reference with identical semantics to the PyTorch module."""
    def conv(x, w, b, s):
        y = jax.lax.conv_general_dilated(
            x, w, window_strides=(s, s), padding="VALID",
            dimension_numbers=("NCHW", "OIHW", "NCHW"))
        return jax.nn.relu(y + b[None, :, None, None])
    x = conv(obs, params["l1_w"], params["l1_b"], stride1)
    x = conv(x, params["l2_w"], params["l2_b"], stride2)
    x = x.reshape(obs.shape[0], -1)
    x = jax.nn.relu(x @ params["l3_w"].T + params["l3_b"])
    x = jax.nn.relu(x @ params["l4_w"].T + params["l4_b"])
    return x


if __name__ == "__main__":
    key = jax.random.PRNGKey(0)
    k_param, k_obs = jax.random.split(key)

    n_actions = 6
    batch, in_ch, width = 2, 4, 36        # small, conv-consistent shapes
    params, cfg = init_qnetwork_params(k_param, n_actions, input_width=width)
    packed = pack_qnetwork_params(params, cfg["input_width"], cfg["stride_sizes"])

    obs = jax.random.normal(k_obs, (batch, in_ch, width, width), jnp.float32)

    out = qnetwork_forward(packed, obs,
                           cfg["stride_sizes"][0], cfg["stride_sizes"][1])
    out = jax.block_until_ready(out)
    assert out.shape == (batch, n_actions), out.shape

    ref = _ref_forward(params, obs,
                       cfg["stride_sizes"][0], cfg["stride_sizes"][1])
    max_err = float(jnp.max(jnp.abs(out - ref)))
    # bf16 MXU operands vs f32 reference -> loose-but-meaningful tolerance
    assert jnp.allclose(out, ref, atol=2e-2, rtol=2e-2), max_err

    print("KERNEL_OK")
</pallas_src>

<mosaic_0001>
module attributes {stable_mosaic.version = 11 : i64} {
  func.func @_qnet_fused_kernel(%arg0: memref<72x144xf32, #tpu.memory_space<vmem>>, %arg1: memref<8x144x128xbf16, #tpu.memory_space<vmem>>, %arg2: memref<8x16x72xbf16, #tpu.memory_space<vmem>>, %arg3: memref<1x128xf32, #tpu.memory_space<vmem>>, %arg4: memref<4x128x96xbf16, #tpu.memory_space<vmem>>, %arg5: memref<4x6x16xbf16, #tpu.memory_space<vmem>>, %arg6: memref<1x96xf32, #tpu.memory_space<vmem>>, %arg7: memref<3x96x256xbf16, #tpu.memory_space<vmem>>, %arg8: memref<3x2x6xbf16, #tpu.memory_space<vmem>>, %arg9: memref<1x256xf32, #tpu.memory_space<vmem>>, %arg10: memref<256x6xbf16, #tpu.memory_space<vmem>>, %arg11: memref<1x6xf32, #tpu.memory_space<vmem>>, %arg12: memref<2x6xf32, #tpu.memory_space<vmem>>) attributes {dimension_semantics = [], scalar_prefetch = 0 : i64, scratch_operands = 0 : i64, tpu.core_type = #tpu.core_type<tc>} {
    %c0 = arith.constant 0 : index
    %c0_0 = arith.constant 0 : index
    %0 = vector.load %arg0[%c0, %c0_0] : memref<72x144xf32, #tpu.memory_space<vmem>>, vector<72x144xf32>
    %1 = arith.truncf %0 : vector<72x144xf32> to vector<72x144xbf16>
    %c0_1 = arith.constant 0 : index
    %c0_2 = arith.constant 0 : index
    %c0_3 = arith.constant 0 : index
    %2 = vector.load %arg2[%c0_1, %c0_2, %c0_3] : memref<8x16x72xbf16, #tpu.memory_space<vmem>>, vector<1x16x72xbf16>
    %3 = vector.shape_cast %2 : vector<1x16x72xbf16> to vector<16x72xbf16>
    %cst = arith.constant dense<0.000000e+00> : vector<16x144xf32>
    %4 = tpu.matmul %3, %1, %cst {dimension_numbers = #tpu.dot_dimension_numbers<[1], [0], [0], [1], [0, 0, 1, 1], [], []>} : vector<16x72xbf16>, vector<72x144xbf16>, vector<16x144xf32> -> vector<16x144xf32>
    %5 = arith.truncf %4 : vector<16x144xf32> to vector<16x144xbf16>
    %c0_4 = arith.constant 0 : index
    %c0_5 = arith.constant 0 : index
    %c0_6 = arith.constant 0 : index
    %6 = vector.load %arg1[%c0_4, %c0_5, %c0_6] : memref<8x144x128xbf16, #tpu.memory_space<vmem>>, vector<1x144x128xbf16>
    %7 = vector.shape_cast %6 : vector<1x144x128xbf16> to vector<144x128xbf16>
    %cst_7 = arith.constant dense<0.000000e+00> : vector<16x128xf32>
    %8 = tpu.matmul %5, %7, %cst_7 {dimension_numbers = #tpu.dot_dimension_numbers<[1], [0], [0], [1], [0, 0, 1, 1], [], []>} : vector<16x144xbf16>, vector<144x128xbf16>, vector<16x128xf32> -> vector<16x128xf32>
    %c1 = arith.constant 1 : index
    %c0_8 = arith.constant 0 : index
    %c0_9 = arith.constant 0 : index
    %9 = vector.load %arg2[%c1, %c0_8, %c0_9] : memref<8x16x72xbf16, #tpu.memory_space<vmem>>, vector<1x16x72xbf16>
    %10 = vector.shape_cast %9 : vector<1x16x72xbf16> to vector<16x72xbf16>
    %cst_10 = arith.constant dense<0.000000e+00> : vector<16x144xf32>
    %11 = tpu.matmul %10, %1, %cst_10 {dimension_numbers = #tpu.dot_dimension_numbers<[1], [0], [0], [1], [0, 0, 1, 1], [], []>} : vector<16x72xbf16>, vector<72x144xbf16>, vector<16x144xf32> -> vector<16x144xf32>
    %12 = arith.truncf %11 : vector<16x144xf32> to vector<16x144xbf16>
    %c1_11 = arith.constant 1 : index
    %c0_12 = arith.constant 0 : index
    %c0_13 = arith.constant 0 : index
    %13 = vector.load %arg1[%c1_11, %c0_12, %c0_13] : memref<8x144x128xbf16, #tpu.memory_space<vmem>>, vector<1x144x128xbf16>
    %14 = vector.shape_cast %13 : vector<1x144x128xbf16> to vector<144x128xbf16>
    %cst_14 = arith.constant dense<0.000000e+00> : vector<16x128xf32>
    %15 = tpu.matmul %12, %14, %cst_14 {dimension_numbers = #tpu.dot_dimension_numbers<[1], [0], [0], [1], [0, 0, 1, 1], [], []>} : vector<16x144xbf16>, vector<144x128xbf16>, vector<16x128xf32> -> vector<16x128xf32>
    %16 = arith.addf %8, %15 : vector<16x128xf32>
    %c2 = arith.constant 2 : index
    %c0_15 = arith.constant 0 : index
    %c0_16 = arith.constant 0 : index
    %17 = vector.load %arg2[%c2, %c0_15, %c0_16] : memref<8x16x72xbf16, #tpu.memory_space<vmem>>, vector<1x16x72xbf16>
    %18 = vector.shape_cast %17 : vector<1x16x72xbf16> to vector<16x72xbf16>
    %cst_17 = arith.constant dense<0.000000e+00> : vector<16x144xf32>
    %19 = tpu.matmul %18, %1, %cst_17 {dimension_numbers = #tpu.dot_dimension_numbers<[1], [0], [0], [1], [0, 0, 1, 1], [], []>} : vector<16x72xbf16>, vector<72x144xbf16>, vector<16x144xf32> -> vector<16x144xf32>
    %20 = arith.truncf %19 : vector<16x144xf32> to vector<16x144xbf16>
    %c2_18 = arith.constant 2 : index
    %c0_19 = arith.constant 0 : index
    %c0_20 = arith.constant 0 : index
    %21 = vector.load %arg1[%c2_18, %c0_19, %c0_20] : memref<8x144x128xbf16, #tpu.memory_space<vmem>>, vector<1x144x128xbf16>
    %22 = vector.shape_cast %21 : vector<1x144x128xbf16> to vector<144x128xbf16>
    %cst_21 = arith.constant dense<0.000000e+00> : vector<16x128xf32>
    %23 = tpu.matmul %20, %22, %cst_21 {dimension_numbers = #tpu.dot_dimension_numbers<[1], [0], [0], [1], [0, 0, 1, 1], [], []>} : vector<16x144xbf16>, vector<144x128xbf16>, vector<16x128xf32> -> vector<16x128xf32>
    %24 = arith.addf %16, %23 : vector<16x128xf32>
    %c3 = arith.constant 3 : index
    %c0_22 = arith.constant 0 : index
    %c0_23 = arith.constant 0 : index
    %25 = vector.load %arg2[%c3, %c0_22, %c0_23] : memref<8x16x72xbf16, #tpu.memory_space<vmem>>, vector<1x16x72xbf16>
    %26 = vector.shape_cast %25 : vector<1x16x72xbf16> to vector<16x72xbf16>
    %cst_24 = arith.constant dense<0.000000e+00> : vector<16x144xf32>
    %27 = tpu.matmul %26, %1, %cst_24 {dimension_numbers = #tpu.dot_dimension_numbers<[1], [0], [0], [1], [0, 0, 1, 1], [], []>} : vector<16x72xbf16>, vector<72x144xbf16>, vector<16x144xf32> -> vector<16x144xf32>
    %28 = arith.truncf %27 : vector<16x144xf32> to vector<16x144xbf16>
    %c3_25 = arith.constant 3 : index
    %c0_26 = arith.constant 0 : index
    %c0_27 = arith.constant 0 : index
    %29 = vector.load %arg1[%c3_25, %c0_26, %c0_27] : memref<8x144x128xbf16, #tpu.memory_space<vmem>>, vector<1x144x128xbf16>
    %30 = vector.shape_cast %29 : vector<1x144x128xbf16> to vector<144x128xbf16>
    %cst_28 = arith.constant dense<0.000000e+00> : vector<16x128xf32>
    %31 = tpu.matmul %28, %30, %cst_28 {dimension_numbers = #tpu.dot_dimension_numbers<[1], [0], [0], [1], [0, 0, 1, 1], [], []>} : vector<16x144xbf16>, vector<144x128xbf16>, vector<16x128xf32> -> vector<16x128xf32>
    %32 = arith.addf %24, %31 : vector<16x128xf32>
    %c4 = arith.constant 4 : index
    %c0_29 = arith.constant 0 : index
    %c0_30 = arith.constant 0 : index
    %33 = vector.load %arg2[%c4, %c0_29, %c0_30] : memref<8x16x72xbf16, #tpu.memory_space<vmem>>, vector<1x16x72xbf16>
    %34 = vector.shape_cast %33 : vector<1x16x72xbf16> to vector<16x72xbf16>
    %cst_31 = arith.constant dense<0.000000e+00> : vector<16x144xf32>
    %35 = tpu.matmul %34, %1, %cst_31 {dimension_numbers = #tpu.dot_dimension_numbers<[1], [0], [0], [1], [0, 0, 1, 1], [], []>} : vector<16x72xbf16>, vector<72x144xbf16>, vector<16x144xf32> -> vector<16x144xf32>
    %36 = arith.truncf %35 : vector<16x144xf32> to vector<16x144xbf16>
    %c4_32 = arith.constant 4 : index
    %c0_33 = arith.constant 0 : index
    %c0_34 = arith.constant 0 : index
    %37 = vector.load %arg1[%c4_32, %c0_33, %c0_34] : memref<8x144x128xbf16, #tpu.memory_space<vmem>>, vector<1x144x128xbf16>
    %38 = vector.shape_cast %37 : vector<1x144x128xbf16> to vector<144x128xbf16>
    %cst_35 = arith.constant dense<0.000000e+00> : vector<16x128xf32>
    %39 = tpu.matmul %36, %38, %cst_35 {dimension_numbers = #tpu.dot_dimension_numbers<[1], [0], [0], [1], [0, 0, 1, 1], [], []>} : vector<16x144xbf16>, vector<144x128xbf16>, vector<16x128xf32> -> vector<16x128xf32>
    %40 = arith.addf %32, %39 : vector<16x128xf32>
    %c5 = arith.constant 5 : index
    %c0_36 = arith.constant 0 : index
    %c0_37 = arith.constant 0 : index
    %41 = vector.load %arg2[%c5, %c0_36, %c0_37] : memref<8x16x72xbf16, #tpu.memory_space<vmem>>, vector<1x16x72xbf16>
    %42 = vector.shape_cast %41 : vector<1x16x72xbf16> to vector<16x72xbf16>
    %cst_38 = arith.constant dense<0.000000e+00> : vector<16x144xf32>
    %43 = tpu.matmul %42, %1, %cst_38 {dimension_numbers = #tpu.dot_dimension_numbers<[1], [0], [0], [1], [0, 0, 1, 1], [], []>} : vector<16x72xbf16>, vector<72x144xbf16>, vector<16x144xf32> -> vector<16x144xf32>
    %44 = arith.truncf %43 : vector<16x144xf32> to vector<16x144xbf16>
    %c5_39 = arith.constant 5 : index
    %c0_40 = arith.constant 0 : index
    %c0_41 = arith.constant 0 : index
    %45 = vector.load %arg1[%c5_39, %c0_40, %c0_41] : memref<8x144x128xbf16, #tpu.memory_space<vmem>>, vector<1x144x128xbf16>
    %46 = vector.shape_cast %45 : vector<1x144x128xbf16> to vector<144x128xbf16>
    %cst_42 = arith.constant dense<0.000000e+00> : vector<16x128xf32>
    %47 = tpu.matmul %44, %46, %cst_42 {dimension_numbers = #tpu.dot_dimension_numbers<[1], [0], [0], [1], [0, 0, 1, 1], [], []>} : vector<16x144xbf16>, vector<144x128xbf16>, vector<16x128xf32> -> vector<16x128xf32>
    %48 = arith.addf %40, %47 : vector<16x128xf32>
    %c6 = arith.constant 6 : index
    %c0_43 = arith.constant 0 : index
    %c0_44 = arith.constant 0 : index
    %49 = vector.load %arg2[%c6, %c0_43, %c0_44] : memref<8x16x72xbf16, #tpu.memory_space<vmem>>, vector<1x16x72xbf16>
    %50 = vector.shape_cast %49 : vector<1x16x72xbf16> to vector<16x72xbf16>
    %cst_45 = arith.constant dense<0.000000e+00> : vector<16x144xf32>
    %51 = tpu.matmul %50, %1, %cst_45 {dimension_numbers = #tpu.dot_dimension_numbers<[1], [0], [0], [1], [0, 0, 1, 1], [], []>} : vector<16x72xbf16>, vector<72x144xbf16>, vector<16x144xf32> -> vector<16x144xf32>
    %52 = arith.truncf %51 : vector<16x144xf32> to vector<16x144xbf16>
    %c6_46 = arith.constant 6 : index
    %c0_47 = arith.constant 0 : index
    %c0_48 = arith.constant 0 : index
    %53 = vector.load %arg1[%c6_46, %c0_47, %c0_48] : memref<8x144x128xbf16, #tpu.memory_space<vmem>>, vector<1x144x128xbf16>
    %54 = vector.shape_cast %53 : vector<1x144x128xbf16> to vector<144x128xbf16>
    %cst_49 = arith.constant dense<0.000000e+00> : vector<16x128xf32>
    %55 = tpu.matmul %52, %54, %cst_49 {dimension_numbers = #tpu.dot_dimension_numbers<[1], [0], [0], [1], [0, 0, 1, 1], [], []>} : vector<16x144xbf16>, vector<144x128xbf16>, vector<16x128xf32> -> vector<16x128xf32>
    %56 = arith.addf %48, %55 : vector<16x128xf32>
    %c7 = arith.constant 7 : index
    %c0_50 = arith.constant 0 : index
    %c0_51 = arith.constant 0 : index
    %57 = vector.load %arg2[%c7, %c0_50, %c0_51] : memref<8x16x72xbf16, #tpu.memory_space<vmem>>, vector<1x16x72xbf16>
    %58 = vector.shape_cast %57 : vector<1x16x72xbf16> to vector<16x72xbf16>
    %cst_52 = arith.constant dense<0.000000e+00> : vector<16x144xf32>
    %59 = tpu.matmul %58, %1, %cst_52 {dimension_numbers = #tpu.dot_dimension_numbers<[1], [0], [0], [1], [0, 0, 1, 1], [], []>} : vector<16x72xbf16>, vector<72x144xbf16>, vector<16x144xf32> -> vector<16x144xf32>
    %60 = arith.truncf %59 : vector<16x144xf32> to vector<16x144xbf16>
    %c7_53 = arith.constant 7 : index
    %c0_54 = arith.constant 0 : index
    %c0_55 = arith.constant 0 : index
    %61 = vector.load %arg1[%c7_53, %c0_54, %c0_55] : memref<8x144x128xbf16, #tpu.memory_space<vmem>>, vector<1x144x128xbf16>
    %62 = vector.shape_cast %61 : vector<1x144x128xbf16> to vector<144x128xbf16>
    %cst_56 = arith.constant dense<0.000000e+00> : vector<16x128xf32>
    %63 = tpu.matmul %60, %62, %cst_56 {dimension_numbers = #tpu.dot_dimension_numbers<[1], [0], [0], [1], [0, 0, 1, 1], [], []>} : vector<16x144xbf16>, vector<144x128xbf16>, vector<16x128xf32> -> vector<16x128xf32>
    %64 = arith.addf %56, %63 : vector<16x128xf32>
    %c0_57 = arith.constant 0 : index
    %c0_58 = arith.constant 0 : index
    %65 = vector.load %arg3[%c0_57, %c0_58] : memref<1x128xf32, #tpu.memory_space<vmem>>, vector<1x128xf32>
    %66 = vector.broadcast %65 : vector<1x128xf32> to vector<16x128xf32>
    %67 = arith.addf %64, %66 : vector<16x128xf32>
    %cst_59 = arith.constant 0.000000e+00 : f32
    %68 = vector.broadcast %cst_59 : f32 to vector<16x128xf32>
    %69 = arith.maximumf %67, %68 : vector<16x128xf32>
    %70 = arith.truncf %69 : vector<16x128xf32> to vector<16x128xbf16>
    %c0_60 = arith.constant 0 : index
    %c0_61 = arith.constant 0 : index
    %c0_62 = arith.constant 0 : index
    %71 = vector.load %arg5[%c0_60, %c0_61, %c0_62] : memref<4x6x16xbf16, #tpu.memory_space<vmem>>, vector<1x6x16xbf16>
    %72 = vector.shape_cast %71 : vector<1x6x16xbf16> to vector<6x16xbf16>
    %cst_63 = arith.constant dense<0.000000e+00> : vector<6x128xf32>
    %73 = tpu.matmul %72, %70, %cst_63 {dimension_numbers = #tpu.dot_dimension_numbers<[1], [0], [0], [1], [0, 0, 1, 1], [], []>} : vector<6x16xbf16>, vector<16x128xbf16>, vector<6x128xf32> -> vector<6x128xf32>
    %74 = arith.truncf %73 : vector<6x128xf32> to vector<6x128xbf16>
    %c0_64 = arith.constant 0 : index
    %c0_65 = arith.constant 0 : index
    %c0_66 = arith.constant 0 : index
    %75 = vector.load %arg4[%c0_64, %c0_65, %c0_66] : memref<4x128x96xbf16, #tpu.memory_space<vmem>>, vector<1x128x96xbf16>
    %76 = vector.shape_cast %75 : vector<1x128x96xbf16> to vector<128x96xbf16>
    %cst_67 = arith.constant dense<0.000000e+00> : vector<6x96xf32>
    %77 = tpu.matmul %74, %76, %cst_67 {dimension_numbers = #tpu.dot_dimension_numbers<[1], [0], [0], [1], [0, 0, 1, 1], [], []>} : vector<6x128xbf16>, vector<128x96xbf16>, vector<6x96xf32> -> vector<6x96xf32>
    %c1_68 = arith.constant 1 : index
    %c0_69 = arith.constant 0 : index
    %c0_70 = arith.constant 0 : index
    %78 = vector.load %arg5[%c1_68, %c0_69, %c0_70] : memref<4x6x16xbf16, #tpu.memory_space<vmem>>, vector<1x6x16xbf16>
    %79 = vector.shape_cast %78 : vector<1x6x16xbf16> to vector<6x16xbf16>
    %cst_71 = arith.constant dense<0.000000e+00> : vector<6x128xf32>
    %80 = tpu.matmul %79, %70, %cst_71 {dimension_numbers = #tpu.dot_dimension_numbers<[1], [0], [0], [1], [0, 0, 1, 1], [], []>} : vector<6x16xbf16>, vector<16x128xbf16>, vector<6x128xf32> -> vector<6x128xf32>
    %81 = arith.truncf %80 : vector<6x128xf32> to vector<6x128xbf16>
    %c1_72 = arith.constant 1 : index
    %c0_73 = arith.constant 0 : index
    %c0_74 = arith.constant 0 : index
    %82 = vector.load %arg4[%c1_72, %c0_73, %c0_74] : memref<4x128x96xbf16, #tpu.memory_space<vmem>>, vector<1x128x96xbf16>
    %83 = vector.shape_cast %82 : vector<1x128x96xbf16> to vector<128x96xbf16>
    %cst_75 = arith.constant dense<0.000000e+00> : vector<6x96xf32>
    %84 = tpu.matmul %81, %83, %cst_75 {dimension_numbers = #tpu.dot_dimension_numbers<[1], [0], [0], [1], [0, 0, 1, 1], [], []>} : vector<6x128xbf16>, vector<128x96xbf16>, vector<6x96xf32> -> vector<6x96xf32>
    %85 = arith.addf %77, %84 : vector<6x96xf32>
    %c2_76 = arith.constant 2 : index
    %c0_77 = arith.constant 0 : index
    %c0_78 = arith.constant 0 : index
    %86 = vector.load %arg5[%c2_76, %c0_77, %c0_78] : memref<4x6x16xbf16, #tpu.memory_space<vmem>>, vector<1x6x16xbf16>
    %87 = vector.shape_cast %86 : vector<1x6x16xbf16> to vector<6x16xbf16>
    %cst_79 = arith.constant dense<0.000000e+00> : vector<6x128xf32>
    %88 = tpu.matmul %87, %70, %cst_79 {dimension_numbers = #tpu.dot_dimension_numbers<[1], [0], [0], [1], [0, 0, 1, 1], [], []>} : vector<6x16xbf16>, vector<16x128xbf16>, vector<6x128xf32> -> vector<6x128xf32>
    %89 = arith.truncf %88 : vector<6x128xf32> to vector<6x128xbf16>
    %c2_80 = arith.constant 2 : index
    %c0_81 = arith.constant 0 : index
    %c0_82 = arith.constant 0 : index
    %90 = vector.load %arg4[%c2_80, %c0_81, %c0_82] : memref<4x128x96xbf16, #tpu.memory_space<vmem>>, vector<1x128x96xbf16>
    %91 = vector.shape_cast %90 : vector<1x128x96xbf16> to vector<128x96xbf16>
    %cst_83 = arith.constant dense<0.000000e+00> : vector<6x96xf32>
    %92 = tpu.matmul %89, %91, %cst_83 {dimension_numbers = #tpu.dot_dimension_numbers<[1], [0], [0], [1], [0, 0, 1, 1], [], []>} : vector<6x128xbf16>, vector<128x96xbf16>, vector<6x96xf32> -> vector<6x96xf32>
    %93 = arith.addf %85, %92 : vector<6x96xf32>
    %c3_84 = arith.constant 3 : index
    %c0_85 = arith.constant 0 : index
    %c0_86 = arith.constant 0 : index
    %94 = vector.load %arg5[%c3_84, %c0_85, %c0_86] : memref<4x6x16xbf16, #tpu.memory_space<vmem>>, vector<1x6x16xbf16>
    %95 = vector.shape_cast %94 : vector<1x6x16xbf16> to vector<6x16xbf16>
    %cst_87 = arith.constant dense<0.000000e+00> : vector<6x128xf32>
    %96 = tpu.matmul %95, %70, %cst_87 {dimension_numbers = #tpu.dot_dimension_numbers<[1], [0], [0], [1], [0, 0, 1, 1], [], []>} : vector<6x16xbf16>, vector<16x128xbf16>, vector<6x128xf32> -> vector<6x128xf32>
    %97 = arith.truncf %96 : vector<6x128xf32> to vector<6x128xbf16>
    %c3_88 = arith.constant 3 : index
    %c0_89 = arith.constant 0 : index
    %c0_90 = arith.constant 0 : index
    %98 = vector.load %arg4[%c3_88, %c0_89, %c0_90] : memref<4x128x96xbf16, #tpu.memory_space<vmem>>, vector<1x128x96xbf16>
    %99 = vector.shape_cast %98 : vector<1x128x96xbf16> to vector<128x96xbf16>
    %cst_91 = arith.constant dense<0.000000e+00> : vector<6x96xf32>
    %100 = tpu.matmul %97, %99, %cst_91 {dimension_numbers = #tpu.dot_dimension_numbers<[1], [0], [0], [1], [0, 0, 1, 1], [], []>} : vector<6x128xbf16>, vector<128x96xbf16>, vector<6x96xf32> -> vector<6x96xf32>
    %101 = arith.addf %93, %100 : vector<6x96xf32>
    %c0_92 = arith.constant 0 : index
    %c0_93 = arith.constant 0 : index
    %102 = vector.load %arg6[%c0_92, %c0_93] : memref<1x96xf32, #tpu.memory_space<vmem>>, vector<1x96xf32>
    %103 = vector.broadcast %102 : vector<1x96xf32> to vector<6x96xf32>
    %104 = arith.addf %101, %103 : vector<6x96xf32>
    %cst_94 = arith.constant 0.000000e+00 : f32
    %105 = vector.broadcast %cst_94 : f32 to vector<6x96xf32>
    %106 = arith.maximumf %104, %105 : vector<6x96xf32>
    %107 = arith.truncf %106 : vector<6x96xf32> to vector<6x96xbf16>
    %c0_95 = arith.constant 0 : index
    %c0_96 = arith.constant 0 : index
    %c0_97 = arith.constant 0 : index
    %108 = vector.load %arg8[%c0_95, %c0_96, %c0_97] : memref<3x2x6xbf16, #tpu.memory_space<vmem>>, vector<1x2x6xbf16>
    %109 = vector.shape_cast %108 : vector<1x2x6xbf16> to vector<2x6xbf16>
    %cst_98 = arith.constant dense<0.000000e+00> : vector<2x96xf32>
    %110 = tpu.matmul %109, %107, %cst_98 {dimension_numbers = #tpu.dot_dimension_numbers<[1], [0], [0], [1], [0, 0, 1, 1], [], []>} : vector<2x6xbf16>, vector<6x96xbf16>, vector<2x96xf32> -> vector<2x96xf32>
    %111 = arith.truncf %110 : vector<2x96xf32> to vector<2x96xbf16>
    %c0_99 = arith.constant 0 : index
    %c0_100 = arith.constant 0 : index
    %c0_101 = arith.constant 0 : index
    %112 = vector.load %arg7[%c0_99, %c0_100, %c0_101] : memref<3x96x256xbf16, #tpu.memory_space<vmem>>, vector<1x96x256xbf16>
    %113 = vector.shape_cast %112 : vector<1x96x256xbf16> to vector<96x256xbf16>
    %cst_102 = arith.constant dense<0.000000e+00> : vector<2x256xf32>
    %114 = tpu.matmul %111, %113, %cst_102 {dimension_numbers = #tpu.dot_dimension_numbers<[1], [0], [0], [1], [0, 0, 1, 1], [], []>} : vector<2x96xbf16>, vector<96x256xbf16>, vector<2x256xf32> -> vector<2x256xf32>
    %c1_103 = arith.constant 1 : index
    %c0_104 = arith.constant 0 : index
    %c0_105 = arith.constant 0 : index
    %115 = vector.load %arg8[%c1_103, %c0_104, %c0_105] : memref<3x2x6xbf16, #tpu.memory_space<vmem>>, vector<1x2x6xbf16>
    %116 = vector.shape_cast %115 : vector<1x2x6xbf16> to vector<2x6xbf16>
    %cst_106 = arith.constant dense<0.000000e+00> : vector<2x96xf32>
    %117 = tpu.matmul %116, %107, %cst_106 {dimension_numbers = #tpu.dot_dimension_numbers<[1], [0], [0], [1], [0, 0, 1, 1], [], []>} : vector<2x6xbf16>, vector<6x96xbf16>, vector<2x96xf32> -> vector<2x96xf32>
    %118 = arith.truncf %117 : vector<2x96xf32> to vector<2x96xbf16>
    %c1_107 = arith.constant 1 : index
    %c0_108 = arith.constant 0 : index
    %c0_109 = arith.constant 0 : index
    %119 = vector.load %arg7[%c1_107, %c0_108, %c0_109] : memref<3x96x256xbf16, #tpu.memory_space<vmem>>, vector<1x96x256xbf16>
    %120 = vector.shape_cast %119 : vector<1x96x256xbf16> to vector<96x256xbf16>
    %cst_110 = arith.constant dense<0.000000e+00> : vector<2x256xf32>
    %121 = tpu.matmul %118, %120, %cst_110 {dimension_numbers = #tpu.dot_dimension_numbers<[1], [0], [0], [1], [0, 0, 1, 1], [], []>} : vector<2x96xbf16>, vector<96x256xbf16>, vector<2x256xf32> -> vector<2x256xf32>
    %122 = arith.addf %114, %121 : vector<2x256xf32>
    %c2_111 = arith.constant 2 : index
    %c0_112 = arith.constant 0 : index
    %c0_113 = arith.constant 0 : index
    %123 = vector.load %arg8[%c2_111, %c0_112, %c0_113] : memref<3x2x6xbf16, #tpu.memory_space<vmem>>, vector<1x2x6xbf16>
    %124 = vector.shape_cast %123 : vector<1x2x6xbf16> to vector<2x6xbf16>
    %cst_114 = arith.constant dense<0.000000e+00> : vector<2x96xf32>
    %125 = tpu.matmul %124, %107, %cst_114 {dimension_numbers = #tpu.dot_dimension_numbers<[1], [0], [0], [1], [0, 0, 1, 1], [], []>} : vector<2x6xbf16>, vector<6x96xbf16>, vector<2x96xf32> -> vector<2x96xf32>
    %126 = arith.truncf %125 : vector<2x96xf32> to vector<2x96xbf16>
    %c2_115 = arith.constant 2 : index
    %c0_116 = arith.constant 0 : index
    %c0_117 = arith.constant 0 : index
    %127 = vector.load %arg7[%c2_115, %c0_116, %c0_117] : memref<3x96x256xbf16, #tpu.memory_space<vmem>>, vector<1x96x256xbf16>
    %128 = vector.shape_cast %127 : vector<1x96x256xbf16> to vector<96x256xbf16>
    %cst_118 = arith.constant dense<0.000000e+00> : vector<2x256xf32>
    %129 = tpu.matmul %126, %128, %cst_118 {dimension_numbers = #tpu.dot_dimension_numbers<[1], [0], [0], [1], [0, 0, 1, 1], [], []>} : vector<2x96xbf16>, vector<96x256xbf16>, vector<2x256xf32> -> vector<2x256xf32>
    %130 = arith.addf %122, %129 : vector<2x256xf32>
    %c0_119 = arith.constant 0 : index
    %c0_120 = arith.constant 0 : index
    %131 = vector.load %arg9[%c0_119, %c0_120] : memref<1x256xf32, #tpu.memory_space<vmem>>, vector<1x256xf32>
    %132 = vector.broadcast %131 : vector<1x256xf32> to vector<2x256xf32>
    %133 = arith.addf %130, %132 : vector<2x256xf32>
    %cst_121 = arith.constant 0.000000e+00 : f32
    %134 = vector.broadcast %cst_121 : f32 to vector<2x256xf32>
    %135 = arith.maximumf %133, %134 : vector<2x256xf32>
    %136 = arith.truncf %135 : vector<2x256xf32> to vector<2x256xbf16>
    %c0_122 = arith.constant 0 : index
    %c0_123 = arith.constant 0 : index
    %137 = vector.load %arg10[%c0_122, %c0_123] : memref<256x6xbf16, #tpu.memory_space<vmem>>, vector<256x6xbf16>
    %cst_124 = arith.constant dense<0.000000e+00> : vector<2x6xf32>
    %138 = tpu.matmul %136, %137, %cst_124 {dimension_numbers = #tpu.dot_dimension_numbers<[1], [0], [0], [1], [0, 0, 1, 1], [], []>} : vector<2x256xbf16>, vector<256x6xbf16>, vector<2x6xf32> -> vector<2x6xf32>
    %c0_125 = arith.constant 0 : index
    %c0_126 = arith.constant 0 : index
    %139 = vector.load %arg11[%c0_125, %c0_126] : memref<1x6xf32, #tpu.memory_space<vmem>>, vector<1x6xf32>
    %140 = vector.broadcast %139 : vector<1x6xf32> to vector<2x6xf32>
    %141 = arith.addf %138, %140 : vector<2x6xf32>
    %cst_127 = arith.constant 0.000000e+00 : f32
    %142 = vector.broadcast %cst_127 : f32 to vector<2x6xf32>
    %143 = arith.maximumf %141, %142 : vector<2x6xf32>
    %c0_128 = arith.constant 0 : index
    %c0_129 = arith.constant 0 : index
    %144 = vector.load %arg12[%c0_128, %c0_129] : memref<2x6xf32, #tpu.memory_space<vmem>>, vector<2x6xf32>
    tpu.vector_store %arg12[%c0_128, %c0_129], %143 {strides = array<i32>} : memref<2x6xf32, #tpu.memory_space<vmem>>, vector<2x6xf32>,
    return
  }
}

</mosaic_0001>

<bundles_post_ra>
// kernel: qnetwork_forward.1
= control target key start
LH: loop header
LB: loop body
LE: loop exit
PB: predicated region body
PF: predicated region fallthrough
CT: control target
= control target key end

     0   :  { %v3627_v7 = vmov 0   ;;  %vm82_vm0 = vcmask 1043456   ;;  %vm78_vm1 = vcmask 588800   ;;  %s4578_s0 = inlined_call_operand.vmem [shape: f32[72,144], index: 0, kind: input, shape index: {}]   ;;  %s4579_s1 = inlined_call_operand.vmem [shape: bf16[8,144,128], index: 1, kind: input, shape index: {}]   ;;  %s4580_s2 = inlined_call_operand.vmem [shape: bf16[8,16,72], index: 2, kind: input, shape index: {}]   ;;  %s4581_s3 = inlined_call_operand.vmem [shape: f32[1,128], index: 3, kind: input, shape index: {}]   ;;  %s4582_s4 = inlined_call_operand.vmem [shape: bf16[4,128,96], index: 4, kind: input, shape index: {}]   ;;  %s4583_s5 = inlined_call_operand.vmem [shape: bf16[4,6,16], index: 5, kind: input, shape index: {}]   ;;  %s4584_s6 = inlined_call_operand.vmem [shape: f32[1,96], index: 6, kind: input, shape index: {}]   ;;  %s4585_s7 = inlined_call_operand.vmem [shape: bf16[3,96,256], index: 7, kind: input, shape index: {}]   ;;  %s4586_s8 = inlined_call_operand.vmem [shape: bf16[3,2,6], index: 8, kind: input, shape index: {}]   ;;  %s4587_s9 = inlined_call_operand.vmem [shape: f32[1,256], index: 9, kind: input, shape index: {}]   ;;  %s4588_s10 = inlined_call_operand.vmem [shape: bf16[256,6], index: 10, kind: input, shape index: {}]   ;;  %s4589_s11 = inlined_call_operand.vmem [shape: f32[1,6], index: 11, kind: input, shape index: {}]   ;;  %s4590_s12 = inlined_call_operand.hbm [shape: f32[2,6], index: 12, kind: output, shape index: {}]  }
   0x1   :  { %v44_v0 = vld [vmem:[%s4578_s0 + $0x8] sm:$0xff]  ;;  %v46_v1 = vld [vmem:[%s4578_s0 + $0x18] sm:$0xff]  ;;  %v43_v2 = vld [vmem:[%s4578_s0] sm:$0xff]  ;;  %121 = vmatprep.mubr.bf16.mxu0 %v3627_v7  ;;  %195 = vmatprep.mubr.bf16.mxu1 %v3627_v7 }
   0x2   :  { %v3705_v3 = vpack.c.bf16 %v46_v1, %v44_v0  ;;  %v45_v4 = vld [vmem:[%s4578_s0 + $0x10] sm:$0xff]  ;;  %v48_v5 = vld [vmem:[%s4578_s0 + $0x28] sm:$0xff]  ;;  %v50_v6 = vld [vmem:[%s4578_s0 + $0x38] sm:$0xff] }
   0x3   :  { %v3718_v8 = vpack.c.bf16 %v45_v4, %v43_v2  ;;  %v3720_v9 = vpack.c.bf16 %v50_v6, %v48_v5  ;;  %v47_v10 = vld [vmem:[%s4578_s0 + $0x20] sm:$0xff]  ;;  %v49_v11 = vld [vmem:[%s4578_s0 + $0x30] sm:$0xff]  ;;  %v52_v12 = vld [vmem:[%s4578_s0 + $0x48] sm:$0xff] }
   0x4   :  { %89 = vmatprep.subr.bf16.mxu0 %v3705_v3  ;;  %163 = vmatprep.subr.bf16.mxu1 %v3705_v3  ;;  %v54_v13 = vld [vmem:[%s4578_s0 + $0x58] sm:$0xff]  ;;  %v3738_v14 = vpack.c.bf16 %v49_v11, %v47_v10  ;;  %v51_v16 = vld [vmem:[%s4578_s0 + $0x40] sm:$0xff]  ;;  %v53_v17 = vld [vmem:[%s4578_s0 + $0x50] sm:$0xff] }
   0x5   :  { %90 = vmatpush1.bf16.msra.mxu0 %v3718_v8  ;;  %164 = vmatpush1.bf16.msra.mxu1 %v3718_v8  ;;  %v3742_v15 = vpack.c.bf16 %v54_v13, %v52_v12  ;;  %v56_v18 = vld [vmem:[%s4578_s0 + $0x68] sm:$0xff]  ;;  %v58_v19 = vld [vmem:[%s4578_s0 + $0x78] sm:$0xff]  ;;  %v55_v20 = vld [vmem:[%s4578_s0 + $0x60] sm:$0xff]  ;;  %v3761_v21 = vpack.c.bf16 %v53_v17, %v51_v16 }
   0x6   :  { %91 = vmatprep.subr.bf16.mxu0 %v3720_v9  ;;  %165 = vmatprep.subr.bf16.mxu1 %v3720_v9  ;;  %v57_v22 = vld [vmem:[%s4578_s0 + $0x70] sm:$0xff]  ;;  %v3768_v23 = vpack.c.bf16 %v58_v19, %v56_v18  ;;  %v60_v24 = vld [vmem:[%s4578_s0 + $0x88] sm:$0xff]  ;;  %v59_v25 = vld [vmem:[%s4578_s0 + $0x80] sm:$0xff] }
   0x7   :  { %v3778_v26 = vpack.c.bf16 %v57_v22, %v55_v20  ;;  %v3782_v27 = vpack.c.bf16 %v60_v24, %v60_v24  ;;  %v69_v28 = vpack.c.bf16 %v59_v25, %v59_v25  ;;  %v3421_v30 = vld [vmem:[%s4580_s2] sm:$0xff]   ;;  %v3422_v31 = vld [vmem:[%s4580_s2 + $0x8] sm:$0xff]   ;;  %v3425_v34 = vld [vmem:[%s4579_s1 + $0x50] sm:$0xff]  }
   0x8   :  { %v3423_v32 = vld [vmem:[%s4579_s1 + $0x48] sm:$0xff]   ;;  %v3424_v33 = vld [vmem:[%s4579_s1] sm:$0xff]   ;;  %v3427_v36 = vld [vmem:[%s4579_s1 + $0x58] sm:$0xff]  }
   0x9   :  { %92 = vmatpush1.bf16.msra.mxu0 %v3738_v14  ;;  %166 = vmatpush1.bf16.msra.mxu1 %v3738_v14  ;;  %v3791_v29 = vsel %vm82_vm0, %v69_v28, 0  ;;  %v3426_v35 = vld [vmem:[%s4579_s1 + $0x8] sm:$0xff]   ;;  %v3428_v37 = vld [vmem:[%s4579_s1 + $0x10] sm:$0xff]   ;;  %v3429_v38 = vld [vmem:[%s4579_s1 + $0x60] sm:$0xff]  }
   0xa   :  { %93 = vmatprep.subr.bf16.mxu0 %v3742_v15  ;;  %167 = vmatprep.subr.bf16.mxu1 %v3742_v15  ;;  %v3430_v39 = vld [vmem:[%s4579_s1 + $0x18] sm:$0xff]   ;;  %v3431_v40 = vld [vmem:[%s4579_s1 + $0x68] sm:$0xff]   ;;  %v3432_v41 = vld [vmem:[%s4579_s1 + $0x20] sm:$0xff]  }
   0xb   :  { %v3433_v42 = vld [vmem:[%s4579_s1 + $0x70] sm:$0xff]   ;;  %v3434_v43 = vld [vmem:[%s4579_s1 + $0x28] sm:$0xff]   ;;  %v3435_v44 = vld [vmem:[%s4579_s1 + $0x78] sm:$0xff]  }
   0xc   :  { %v3436_v45 = vld [vmem:[%s4579_s1 + $0x30] sm:$0xff]   ;;  %v3437_v46 = vld [vmem:[%s4579_s1 + $0x80] sm:$0xff]   ;;  %v3438_v47 = vld [vmem:[%s4579_s1 + $0x38] sm:$0xff]  }
   0xd   :  { %94 = vmatpush1.bf16.msra.mxu0 %v3761_v21  ;;  %168 = vmatpush1.bf16.msra.mxu1 %v3761_v21  ;;  %v3439_v48 = vld [vmem:[%s4579_s1 + $0x88] sm:$0xff]   ;;  %v3440_v49 = vld [vmem:[%s4579_s1 + $0x40] sm:$0xff]  }
   0xe   :  { %95 = vmatprep.subr.bf16.mxu0 %v3768_v23  ;;  %169 = vmatprep.subr.bf16.mxu1 %v3768_v23 }
  0x11   :  { %96 = vmatpush1.bf16.msra.mxu0 %v3778_v26  ;;  %170 = vmatpush1.bf16.msra.mxu1 %v3778_v26 }
  0x12   :  { %2806 = vmatprep.subr.msk.bf16.mxu0 %vm82_vm0, %v3782_v27  ;;  %2811 = vmatprep.subr.msk.bf16.mxu1 %vm82_vm0, %v3782_v27 }
  0x15   :  { %98 = vmatpush1.bf16.msra.mxu0 %v3791_v29  ;;  %172 = vmatpush1.bf16.msra.mxu1 %v3791_v29 }
  0x16   :  { %285 = vmatprep.subr.bf16.mxu0 %v3627_v7  ;;  %383 = vmatprep.subr.bf16.mxu1 %v3627_v7 }
  0x18   :  { %2807 = vmatmul.mubr.msk.bf16.vlgmr.msra.gmra.mrb[0].mxu0 %vm78_vm1, %v3421_v30  ;;  %2812 = vmatmul.mubr.msk.bf16.vlgmr.msra.gmra.mrb[0].mxu1 %vm78_vm1, %v3422_v31 }
  0x19   :  { %286 = vmatpush1.bf16.msra.mxu0 %v3423_v32  ;;  %384 = vmatpush1.bf16.msra.mxu1 %v3424_v33 }
  0x1a   :  { %287 = vmatprep.subr.bf16.mxu0 %v3627_v7  ;;  %385 = vmatprep.subr.bf16.mxu1 %v3627_v7 }
  0x1d   :  { %288 = vmatpush1.bf16.msra.mxu0 %v3425_v34  ;;  %386 = vmatpush1.bf16.msra.mxu1 %v3426_v35 }
  0x1e   :  { %289 = vmatprep.subr.bf16.mxu0 %v3627_v7  ;;  %387 = vmatprep.subr.bf16.mxu1 %v3627_v7 }
  0x21   :  { %290 = vmatpush1.bf16.msra.mxu0 %v3427_v36  ;;  %388 = vmatpush1.bf16.msra.mxu1 %v3428_v37 }
  0x22   :  { %291 = vmatprep.subr.bf16.mxu0 %v3627_v7  ;;  %389 = vmatprep.subr.bf16.mxu1 %v3627_v7 }
  0x25   :  { %292 = vmatpush1.bf16.msra.mxu0 %v3429_v38  ;;  %390 = vmatpush1.bf16.msra.mxu1 %v3430_v39 }
  0x26   :  { %293 = vmatprep.subr.bf16.mxu0 %v3627_v7  ;;  %391 = vmatprep.subr.bf16.mxu1 %v3627_v7 }
  0x29   :  { %294 = vmatpush1.bf16.msra.mxu0 %v3431_v40  ;;  %392 = vmatpush1.bf16.msra.mxu1 %v3432_v41 }
  0x2a   :  { %295 = vmatprep.subr.bf16.mxu0 %v3627_v7  ;;  %393 = vmatprep.subr.bf16.mxu1 %v3627_v7 }
  0x2d   :  { %296 = vmatpush1.bf16.msra.mxu0 %v3433_v42  ;;  %394 = vmatpush1.bf16.msra.mxu1 %v3434_v43 }
  0x2e   :  { %297 = vmatprep.subr.bf16.mxu0 %v3627_v7  ;;  %395 = vmatprep.subr.bf16.mxu1 %v3627_v7 }
  0x31   :  { %298 = vmatpush1.bf16.msra.mxu0 %v3435_v44  ;;  %396 = vmatpush1.bf16.msra.mxu1 %v3436_v45 }
  0x32   :  { %299 = vmatprep.subr.bf16.mxu0 %v3627_v7  ;;  %397 = vmatprep.subr.bf16.mxu1 %v3627_v7 }
  0x35   :  { %300 = vmatpush1.bf16.msra.mxu0 %v3437_v46  ;;  %398 = vmatpush1.bf16.msra.mxu1 %v3438_v47 }
  0x36   :  { %301 = vmatprep.subr.bf16.mxu0 %v3627_v7  ;;  %399 = vmatprep.subr.bf16.mxu1 %v3627_v7 }
  0x39   :  { %302 = vmatpush1.bf16.msra.mxu0 %v3439_v48  ;;  %400 = vmatpush1.bf16.msra.mxu1 %v3440_v49 }
  0x3a   :  { %435 = vmatprep.subr.bf16.mxu0 %v3705_v3 }
  0x3b   :  { %17 = vsyncpa [#allocation3], 0  ;;  %556 = vmatprep.subr.bf16.mxu1 %v3627_v7  ;;  %vm281_vm2 = vcmask 130048   ;;  %v3444_v62 = vld [vmem:[%s4579_s1 + $0x90] sm:$0xff]   ;;  %v3445_v63 = vld [vmem:[%s4579_s1 + $0x98] sm:$0xff]   ;;  %vm3629_vm3 = vmmov 0  }
  0x3c   :  { %v3446_v0 = vld [vmem:[%s4579_s1 + $0xa0] sm:$0xff]   ;;  %v3441_v1 = vld [vmem:[%s4580_s2 + $0x10] sm:$0xff]   ;;  %v3442_v2 = vld [vmem:[%s4580_s2 + $0x18] sm:$0xff]   ;;  %vm2105_vm4 = vcmask 1042432   ;;  %vm2101_vm5 = vcmask 48128   ;;  %vm2281_vm6 = vcmask 785408  }
  0x3d   :  { %v3443_v4 = vld [vmem:[%s4580_s2 + $0x20] sm:$0xff]   ;;  %v3447_v5 = vld [vmem:[%s4579_s1 + $0xa8] sm:$0xff]   ;;  %v3448_v6 = vld [vmem:[%s4579_s1 + $0xb0] sm:$0xff]   ;;  %s3630_s21 = smov [#allocation2]   ;;  %vm2789_vm7 = vcmask 41984  }
  0x3e   :  { %v3449_v10 = vld [vmem:[%s4579_s1 + $0xb8] sm:$0xff]   ;;  %v3450_v11 = vld [vmem:[%s4579_s1 + $0xc0] sm:$0xff]   ;;  %v3451_v12 = vld [vmem:[%s4579_s1 + $0xc8] sm:$0xff]  }
  0x3f   :  { %v3452_v13 = vld [vmem:[%s4579_s1 + $0xd0] sm:$0xff]   ;;  %v3455_v16 = vld [vmem:[%s4579_s1 + $0x120] sm:$0xff]   ;;  %v3457_v17 = vld [vmem:[%s4579_s1 + $0x128] sm:$0xff]  }
  0x40   :  { %v3459_v18 = vld [vmem:[%s4579_s1 + $0x130] sm:$0xff]   ;;  %v3461_v19 = vld [vmem:[%s4579_s1 + $0x138] sm:$0xff]   ;;  %v3463_v20 = vld [vmem:[%s4579_s1 + $0x140] sm:$0xff]  }
  0x41   :  { %v3465_v22 = vld [vmem:[%s4579_s1 + $0x148] sm:$0xff]   ;;  %v3467_v24 = vld [vmem:[%s4579_s1 + $0x150] sm:$0xff]   ;;  %v3469_v25 = vld [vmem:[%s4579_s1 + $0x158] sm:$0xff]  }
  0x42   :  { %v3470_v28 = vld [vmem:[%s4579_s1 + $0x160] sm:$0xff]   ;;  %v3453_v46 = vld [vmem:[%s4579_s1 + $0xd8] sm:$0xff]   ;;  %v3456_v48 = vld [vmem:[%s4579_s1 + $0xe8] sm:$0xff]  }
  0x43   :  { %v3454_v47 = vld [vmem:[%s4579_s1 + $0xe0] sm:$0xff]   ;;  %v3458_v49 = vld [vmem:[%s4579_s1 + $0xf0] sm:$0xff]  }
  0xeb   :  { %v123_v50 = vpop.f32.mrb[0].mxu0  ;;  %v197_v51 = vpop.f32.mrb[0].mxu1 }
  0xec   :  { %v125_v52 = vpop.f32.mrb[1].mxu0  ;;  %v199_v53 = vpop.f32.mrb[1].mxu1 }
  0xed   :  { %v127_v54 = vpop.f32.mrb[2].mxu0  ;;  %v201_v55 = vpop.f32.mrb[2].mxu1 }
  0xee   :  { %v132_v56 = vpack.c.bf16 %v127_v54, %v123_v50  ;;  %v206_v57 = vpack.c.bf16 %v201_v55, %v197_v51  ;;  %v129_v58 = vpop.f32.mrb[3].mxu0  ;;  %v203_v59 = vpop.f32.mrb[3].mxu1  ;;  %v3460_v50 = vld [vmem:[%s4579_s1 + $0xf8] sm:$0xff]  }
  0xef   :  { %v133_v60 = vpack.c.bf16 %v129_v58, %v125_v52  ;;  %v207_v61 = vpack.c.bf16 %v203_v59, %v199_v53  ;;  %v3464_v58 = vld [vmem:[%s4579_s1 + $0x108] sm:$0xff]   ;;  %v3466_v59 = vld [vmem:[%s4579_s1 + $0x110] sm:$0xff]  }
  0xf1   :  { %2840 = vmatprep.mubr.msk.bf16.mxu0 %vm281_vm2, %v207_v61  ;;  %2850 = vmatprep.mubr.msk.bf16.mxu1 %vm281_vm2, %v133_v60  ;;  %v3468_v60 = vld [vmem:[%s4579_s1 + $0x118] sm:$0xff]  }
  0xf2   :  { %318 = vmatmul.mubr.bf16.vlgmr.msra.gmra.mrb[4].mxu0 %v206_v57  ;;  %416 = vmatmul.mubr.bf16.vlgmr.msra.gmra.mrb[4].mxu1 %v132_v56  ;;  %v3462_v56 = vld [vmem:[%s4579_s1 + $0x100] sm:$0xff]  }
  0xf3   :  { %436 = vmatpush1.bf16.msra.mxu0 %v3718_v8  ;;  %467 = vmatprep.mubr.bf16.mxu0 %v3627_v7 }
  0xf4   :  { %437 = vmatprep.subr.bf16.mxu0 %v3720_v9  ;;  %557 = vmatpush1.bf16.msra.mxu1 %v3444_v62 }
  0xf5   :  { %558 = vmatprep.subr.bf16.mxu1 %v3627_v7 }
  0xf7   :  { %438 = vmatpush1.bf16.msra.mxu0 %v3738_v14 }
  0xf8   :  { %439 = vmatprep.subr.bf16.mxu0 %v3742_v15  ;;  %559 = vmatpush1.bf16.msra.mxu1 %v3445_v63 }
  0xf9   :  { %560 = vmatprep.subr.bf16.mxu1 %v3627_v7 }
  0xfb   :  { %440 = vmatpush1.bf16.msra.mxu0 %v3761_v21 }
  0xfc   :  { %441 = vmatprep.subr.bf16.mxu0 %v3768_v23  ;;  %561 = vmatpush1.bf16.msra.mxu1 %v3446_v0 }
  0xfd   :  { %562 = vmatprep.subr.bf16.mxu1 %v3627_v7 }
  0xff   :  { %442 = vmatpush1.bf16.msra.mxu0 %v3778_v26 }
 0x100   :  { %2854 = vmatprep.subr.msk.bf16.mxu0 %vm82_vm0, %v3782_v27  ;;  %563 = vmatpush1.bf16.msra.mxu1 %v3447_v5  ;;  %v3472_v5 = vld [vmem:[%s4580_s2 + $0x30] sm:$0xff]  }
 0x101   :  { %564 = vmatprep.subr.bf16.mxu1 %v3627_v7 }
 0x103   :  { %444 = vmatpush1.bf16.msra.mxu0 %v3791_v29 }
 0x104   :  { %610 = vmatprep.subr.bf16.mxu0 %v3705_v3  ;;  %565 = vmatpush1.bf16.msra.mxu1 %v3448_v6  ;;  %v3473_v6 = vld [vmem:[%s4579_s1 + $0x168] sm:$0xff]  }
 0x105   :  { %566 = vmatprep.subr.bf16.mxu1 %v3627_v7 }
 0x106   :  { %2855 = vmatmul.mubr.msk.bf16.vlgmr.msra.gmra.mrb[8].mxu0 %vm78_vm1, %v3441_v1 }
 0x107   :  { %611 = vmatpush1.bf16.msra.mxu0 %v3718_v8  ;;  %642 = vmatprep.mubr.bf16.mxu0 %v3627_v7 }
 0x108   :  { %612 = vmatprep.subr.bf16.mxu0 %v3720_v9  ;;  %567 = vmatpush1.bf16.msra.mxu1 %v3449_v10  ;;  %v3475_v10 = vld [vmem:[%s4579_s1 + $0x1b0] sm:$0xff]  }
 0x109   :  { %568 = vmatprep.subr.bf16.mxu1 %v3627_v7 }
 0x10b   :  { %613 = vmatpush1.bf16.msra.mxu0 %v3738_v14 }
 0x10c   :  { %614 = vmatprep.subr.bf16.mxu0 %v3742_v15  ;;  %569 = vmatpush1.bf16.msra.mxu1 %v3450_v11  ;;  %v3474_v11 = vld [vmem:[%s4579_s1 + $0x170] sm:$0xff]  }
 0x10d   :  { %570 = vmatprep.subr.bf16.mxu1 %v3627_v7 }
 0x10f   :  { %615 = vmatpush1.bf16.msra.mxu0 %v3761_v21 }
 0x110   :  { %616 = vmatprep.subr.bf16.mxu0 %v3768_v23  ;;  %571 = vmatpush1.bf16.msra.mxu1 %v3451_v12  ;;  %v3476_v12 = vld [vmem:[%s4579_s1 + $0x178] sm:$0xff]  }
 0x111   :  { %572 = vmatprep.subr.bf16.mxu1 %v3627_v7 }
 0x113   :  { %617 = vmatpush1.bf16.msra.mxu0 %v3778_v26 }
 0x114   :  { %2887 = vmatprep.subr.msk.bf16.mxu0 %vm82_vm0, %v3782_v27  ;;  %573 = vmatpush1.bf16.msra.mxu1 %v3452_v13  ;;  %v3477_v13 = vld [vmem:[%s4579_s1 + $0x1b8] sm:$0xff]  }
 0x115   :  { %731 = vmatprep.subr.bf16.mxu1 %v3627_v7 }
 0x117   :  { %619 = vmatpush1.bf16.msra.mxu0 %v3791_v29 }
 0x118   :  { %785 = vmatprep.subr.bf16.mxu0 %v3705_v3 }
 0x11a   :  { %2888 = vmatmul.mubr.msk.bf16.vlgmr.msra.gmra.mrb[12].mxu0 %vm78_vm1, %v3442_v2 }
 0x11b   :  { %786 = vmatpush1.bf16.msra.mxu0 %v3718_v8  ;;  %817 = vmatprep.mubr.bf16.mxu0 %v3627_v7 }
 0x11c   :  { %787 = vmatprep.subr.bf16.mxu0 %v3720_v9 }
 0x11f   :  { %788 = vmatpush1.bf16.msra.mxu0 %v3738_v14 }
 0x120   :  { %789 = vmatprep.subr.bf16.mxu0 %v3742_v15 }
 0x123   :  { %790 = vmatpush1.bf16.msra.mxu0 %v3761_v21 }
 0x124   :  { %791 = vmatprep.subr.bf16.mxu0 %v3768_v23 }
 0x127   :  { %792 = vmatpush1.bf16.msra.mxu0 %v3778_v26 }
 0x128   :  { %2920 = vmatprep.subr.msk.bf16.mxu0 %vm82_vm0, %v3782_v27 }
 0x12b   :  { %794 = vmatpush1.bf16.msra.mxu0 %v3791_v29 }
 0x12c   :  { %906 = vmatprep.subr.bf16.mxu0 %v3627_v7 }
 0x12e   :  { %2921 = vmatmul.mubr.msk.bf16.vlgmr.msra.gmra.mrb[16].mxu0 %vm78_vm1, %v3443_v4  ;;  %v3471_v4 = vld [vmem:[%s4580_s2 + $0x28] sm:$0xff]  }
 0x12f   :  { %907 = vmatpush1.bf16.msra.mxu0 %v3455_v16  ;;  %v3478_v16 = vld [vmem:[%s4579_s1 + $0x180] sm:$0xff]  }
 0x130   :  { %908 = vmatprep.subr.bf16.mxu0 %v3627_v7 }
 0x133   :  { %909 = vmatpush1.bf16.msra.mxu0 %v3457_v17  ;;  %v3479_v17 = vld [vmem:[%s4579_s1 + $0x1c0] sm:$0xff]  }
 0x134   :  { %910 = vmatprep.subr.bf16.mxu0 %v3627_v7 }
 0x137   :  { %911 = vmatpush1.bf16.msra.mxu0 %v3459_v18  ;;  %v3480_v18 = vld [vmem:[%s4579_s1 + $0x188] sm:$0xff]  }
 0x138   :  { %912 = vmatprep.subr.bf16.mxu0 %v3627_v7 }
 0x13b   :  { %913 = vmatpush1.bf16.msra.mxu0 %v3461_v19  ;;  %v3481_v19 = vld [vmem:[%s4579_s1 + $0x1c8] sm:$0xff]  }
 0x13c   :  { %914 = vmatprep.subr.bf16.mxu0 %v3627_v7 }
 0x13f   :  { %915 = vmatpush1.bf16.msra.mxu0 %v3463_v20  ;;  %v3482_v20 = vld [vmem:[%s4579_s1 + $0x190] sm:$0xff]  }
 0x140   :  { %916 = vmatprep.subr.bf16.mxu0 %v3627_v7 }
 0x143   :  { %917 = vmatpush1.bf16.msra.mxu0 %v3465_v22  ;;  %v3483_v22 = vld [vmem:[%s4579_s1 + $0x1d0] sm:$0xff]  }
 0x144   :  { %918 = vmatprep.subr.bf16.mxu0 %v3627_v7 }
 0x147   :  { %919 = vmatpush1.bf16.msra.mxu0 %v3467_v24  ;;  %v3484_v24 = vld [vmem:[%s4579_s1 + $0x198] sm:$0xff]  }
 0x148   :  { %920 = vmatprep.subr.bf16.mxu0 %v3627_v7 }
 0x14b   :  { %921 = vmatpush1.bf16.msra.mxu0 %v3469_v25  ;;  %v3485_v25 = vld [vmem:[%s4579_s1 + $0x1d8] sm:$0xff]  }
 0x14c   :  { %922 = vmatprep.subr.bf16.mxu0 %v3627_v7 }
 0x14f   :  { %923 = vmatpush1.bf16.msra.mxu0 %v3470_v28  ;;  %v3486_v28 = vld [vmem:[%s4579_s1 + $0x1a0] sm:$0xff]  }
 0x150   :  { %1135 = vmatprep.subr.bf16.mxu0 %v3705_v3 }
 0x1c5   :  { %v319_v30 = vpop.f32.mrb[4].mxu0  ;;  %v417_v31 = vpop.f32.mrb[4].mxu1 }
 0x1c6   :  { %v3999_v32 = vadd.f32 %v417_v31, %v319_v30  ;;  %v321_v33 = vpop.f32.mrb[5].mxu0  ;;  %v419_v34 = vpop.f32.mrb[5].mxu1  ;;  %v3487_v30 = vld [vmem:[%s4579_s1 + $0x1e0] sm:$0xff]   ;;  %v3488_v31 = vld [vmem:[%s4579_s1 + $0x1a8] sm:$0xff]  }
 0x1c7   :  { %v322_v35 = vpop.f32.mrb[6].mxu0  ;;  %v420_v36 = vpop.f32.mrb[6].mxu1  ;;  %v3489_v33 = vld [vmem:[%s4579_s1 + $0x1e8] sm:$0xff]   ;;  %v3490_v34 = vld [vmem:[%s4579_s1 + $0x1f0] sm:$0xff]  }
 0x1c8   :  { %v4001_v37 = vadd.f32 %v420_v36, %v322_v35  ;;  %v324_v38 = vpop.f32.mrb[7].mxu0  ;;  %v422_v39 = vpop.f32.mrb[7].mxu1 }
 0x1d9   :  { %v469_v40 = vpop.f32.mrb[8].mxu0 }
 0x1da   :  { %v471_v41 = vpop.f32.mrb[9].mxu0 }
 0x1db   :  { %v473_v42 = vpop.f32.mrb[10].mxu0 }
 0x1dc   :  { %v478_v43 = vpack.c.bf16 %v473_v42, %v469_v40  ;;  %v475_v44 = vpop.f32.mrb[11].mxu0 }
 0x1dd   :  { %v479_v45 = vpack.c.bf16 %v475_v44, %v471_v41 }
 0x1df   :  { %2883 = vmatprep.mubr.msk.bf16.mxu1 %vm281_vm2, %v479_v45 }
 0x1e0   :  { %589 = vmatmul.mubr.bf16.vlgmr.msra.gmra.mrb[8].mxu1 %v478_v43 }
 0x1e1   :  { %732 = vmatpush1.bf16.msra.mxu1 %v3453_v46 }
 0x1e2   :  { %733 = vmatprep.subr.bf16.mxu1 %v3627_v7 }
 0x1e5   :  { %734 = vmatpush1.bf16.msra.mxu1 %v3454_v47 }
 0x1e6   :  { %735 = vmatprep.subr.bf16.mxu1 %v3627_v7 }
 0x1e9   :  { %736 = vmatpush1.bf16.msra.mxu1 %v3456_v48 }
 0x1ea   :  { %737 = vmatprep.subr.bf16.mxu1 %v3627_v7 }
 0x1ed   :  { %738 = vmatpush1.bf16.msra.mxu1 %v3458_v49  ;;  %v644_v51 = vpop.f32.mrb[12].mxu0 }
 0x1ee   :  { %739 = vmatprep.subr.bf16.mxu1 %v3627_v7  ;;  %v646_v52 = vpop.f32.mrb[13].mxu0 }
 0x1ef   :  { %v648_v53 = vpop.f32.mrb[14].mxu0 }
 0x1f0   :  { %v653_v54 = vpack.c.bf16 %v648_v53, %v644_v51  ;;  %v650_v55 = vpop.f32.mrb[15].mxu0 }
 0x1f1   :  { %740 = vmatpush1.bf16.msra.mxu1 %v3460_v50  ;;  %v654_v57 = vpack.c.bf16 %v650_v55, %v646_v52 }
 0x1f2   :  { %741 = vmatprep.subr.bf16.mxu1 %v3627_v7 }
 0x1f3   :  { %2916 = vmatprep.mubr.msk.bf16.mxu1 %vm281_vm2, %v654_v57 }
 0x1f5   :  { %742 = vmatpush1.bf16.msra.mxu1 %v3462_v56 }
 0x1f6   :  { %743 = vmatprep.subr.bf16.mxu1 %v3627_v7 }
 0x1f9   :  { %744 = vmatpush1.bf16.msra.mxu1 %v3464_v58 }
 0x1fa   :  { %745 = vmatprep.subr.bf16.mxu1 %v3627_v7 }
 0x1fd   :  { %746 = vmatpush1.bf16.msra.mxu1 %v3466_v59 }
 0x1fe   :  { %747 = vmatprep.subr.bf16.mxu1 %v3627_v7 }
 0x201   :  { %748 = vmatpush1.bf16.msra.mxu1 %v3468_v60  ;;  %v819_v61 = vpop.f32.mrb[16].mxu0 }
 0x202   :  { %v821_v62 = vpop.f32.mrb[17].mxu0  ;;  %960 = vmatprep.subr.bf16.mxu1 %v3705_v3 }
 0x203   :  { %v823_v63 = vpop.f32.mrb[18].mxu0 }
 0x204   :  { %764 = vmatmul.mubr.bf16.vlgmr.msra.gmra.mrb[12].mxu1 %v653_v54  ;;  %v828_v0 = vpack.c.bf16 %v823_v63, %v819_v61  ;;  %v825_v1 = vpop.f32.mrb[19].mxu0  ;;  %v3500_v63 = vld [vmem:[%s4579_s1 + $0x238] sm:$0xff]  }
 0x205   :  { %v829_v2 = vpack.c.bf16 %v825_v1, %v821_v62  ;;  %961 = vmatpush1.bf16.msra.mxu1 %v3718_v8  ;;  %992 = vmatprep.mubr.bf16.mxu1 %v3627_v7 }
 0x206   :  { %962 = vmatprep.subr.bf16.mxu1 %v3720_v9 }
 0x207   :  { %2949 = vmatprep.mubr.msk.bf16.mxu0 %vm281_vm2, %v829_v2 }
 0x208   :  { %939 = vmatmul.mubr.bf16.vlgmr.msra.gmra.mrb[20].mxu0 %v828_v0 }
 0x209   :  { %963 = vmatpush1.bf16.msra.mxu1 %v3738_v14  ;;  %1136 = vmatpush1.bf16.msra.mxu0 %v3718_v8 }
 0x20a   :  { %964 = vmatprep.subr.bf16.mxu1 %v3742_v15  ;;  %1137 = vmatprep.subr.bf16.mxu0 %v3720_v9 }
 0x20b   :  { %1167 = vmatprep.mubr.bf16.mxu0 %v3627_v7 }
 0x20d   :  { %965 = vmatpush1.bf16.msra.mxu1 %v3761_v21  ;;  %1138 = vmatpush1.bf16.msra.mxu0 %v3738_v14 }
 0x20e   :  { %966 = vmatprep.subr.bf16.mxu1 %v3768_v23  ;;  %1139 = vmatprep.subr.bf16.mxu0 %v3742_v15 }
 0x211   :  { %967 = vmatpush1.bf16.msra.mxu1 %v3778_v26  ;;  %1140 = vmatpush1.bf16.msra.mxu0 %v3761_v21 }
 0x212   :  { %2953 = vmatprep.subr.msk.bf16.mxu1 %vm82_vm0, %v3782_v27  ;;  %1141 = vmatprep.subr.bf16.mxu0 %v3768_v23 }
 0x215   :  { %969 = vmatpush1.bf16.msra.mxu1 %v3791_v29  ;;  %1142 = vmatpush1.bf16.msra.mxu0 %v3778_v26 }
 0x216   :  { %2986 = vmatprep.subr.msk.bf16.mxu0 %vm82_vm0, %v3782_v27  ;;  %1081 = vmatprep.subr.bf16.mxu1 %v3627_v7 }
 0x218   :  { %2954 = vmatmul.mubr.msk.bf16.vlgmr.msra.gmra.mrb[16].mxu1 %vm78_vm1, %v3471_v4 }
 0x219   :  { %1144 = vmatpush1.bf16.msra.mxu0 %v3791_v29  ;;  %1082 = vmatpush1.bf16.msra.mxu1 %v3473_v6 }
 0x21a   :  { %1256 = vmatprep.subr.bf16.mxu0 %v3627_v7  ;;  %1083 = vmatprep.subr.bf16.mxu1 %v3627_v7 }
 0x21c   :  { %2987 = vmatmul.mubr.msk.bf16.vlgmr.msra.gmra.mrb[24].mxu0 %vm78_vm1, %v3472_v5 }
 0x21d   :  { %1257 = vmatpush1.bf16.msra.mxu0 %v3475_v10  ;;  %1084 = vmatpush1.bf16.msra.mxu1 %v3474_v11 }
 0x21e   :  { %1258 = vmatprep.subr.bf16.mxu0 %v3627_v7  ;;  %1085 = vmatprep.subr.bf16.mxu1 %v3627_v7 }
 0x221   :  { %1086 = vmatpush1.bf16.msra.mxu1 %v3476_v12  ;;  %1259 = vmatpush1.bf16.msra.mxu0 %v3477_v13 }
 0x222   :  { %1087 = vmatprep.subr.bf16.mxu1 %v3627_v7  ;;  %1260 = vmatprep.subr.bf16.mxu0 %v3627_v7 }
 0x225   :  { %1088 = vmatpush1.bf16.msra.mxu1 %v3478_v16  ;;  %1261 = vmatpush1.bf16.msra.mxu0 %v3479_v17 }
 0x226   :  { %1089 = vmatprep.subr.bf16.mxu1 %v3627_v7  ;;  %1262 = vmatprep.subr.bf16.mxu0 %v3627_v7 }
 0x229   :  { %1090 = vmatpush1.bf16.msra.mxu1 %v3480_v18  ;;  %1263 = vmatpush1.bf16.msra.mxu0 %v3481_v19 }
 0x22a   :  { %1091 = vmatprep.subr.bf16.mxu1 %v3627_v7  ;;  %1264 = vmatprep.subr.bf16.mxu0 %v3627_v7 }
 0x22d   :  { %1092 = vmatpush1.bf16.msra.mxu1 %v3482_v20  ;;  %1265 = vmatpush1.bf16.msra.mxu0 %v3483_v22 }
 0x22e   :  { %1093 = vmatprep.subr.bf16.mxu1 %v3627_v7  ;;  %1266 = vmatprep.subr.bf16.mxu0 %v3627_v7 }
 0x231   :  { %1094 = vmatpush1.bf16.msra.mxu1 %v3484_v24  ;;  %1267 = vmatpush1.bf16.msra.mxu0 %v3485_v25 }
 0x232   :  { %1095 = vmatprep.subr.bf16.mxu1 %v3627_v7  ;;  %1268 = vmatprep.subr.bf16.mxu0 %v3627_v7 }
 0x235   :  { %1096 = vmatpush1.bf16.msra.mxu1 %v3486_v28  ;;  %1269 = vmatpush1.bf16.msra.mxu0 %v3487_v30  ;;  %v3628_v28 = vmov 0.0  }
 0x236   :  { %1097 = vmatprep.subr.bf16.mxu1 %v3627_v7  ;;  %1270 = vmatprep.subr.bf16.mxu0 %v3627_v7 }
 0x239   :  { %1098 = vmatpush1.bf16.msra.mxu1 %v3488_v31  ;;  %1271 = vmatpush1.bf16.msra.mxu0 %v3489_v33  ;;  %v3049_v31 = vld [vmem:[%s4581_s3] ss:$0 sm:$0xff] }
 0x23a   :  { %1310 = vmatprep.subr.bf16.mxu1 %v3705_v3  ;;  %1272 = vmatprep.subr.bf16.mxu0 %v3627_v7 }
 0x23d   :  { %1273 = vmatpush1.bf16.msra.mxu0 %v3490_v34 }
 0x23e   :  { %3301 = vmatprep.subr.bf16.mxu0 %v3628_v28 }
 0x2b3   :  { %v590_v35 = vpop.f32.mrb[8].mxu1 }
 0x2b4   :  { %v597_v36 = vadd.f32 %v590_v35, %v3999_v32  ;;  %v592_v38 = vpop.f32.mrb[9].mxu1 }
 0x2b5   :  { %v593_v39 = vpop.f32.mrb[10].mxu1 }
 0x2b6   :  { %v598_v40 = vadd.f32 %v593_v39, %v4001_v37  ;;  %v595_v41 = vpop.f32.mrb[11].mxu1 }
 0x2d7   :  { %v765_v42 = vpop.f32.mrb[12].mxu1 }
 0x2d8   :  { %v772_v43 = vadd.f32 %v765_v42, %v597_v36  ;;  %v767_v44 = vpop.f32.mrb[13].mxu1 }
 0x2d9   :  { %v768_v45 = vpop.f32.mrb[14].mxu1  ;;  %v1486_v44 = vld [vmem:[%s4583_s5] sm:$0x7] }
 0x2da   :  { %v773_v3 = vadd.f32 %v768_v45, %v598_v40  ;;  %v770_v46 = vpop.f32.mrb[15].mxu1  ;;  %v3051_v45 = vld [vmem:[%s4583_s5 + $0x4] sm:$0x7] }
 0x2db   :  { %v940_v47 = vpop.f32.mrb[20].mxu0  ;;  %v3502_v46 = vld [vmem:[%s4582_s4] sm:$0xff]  }
 0x2dc   :  { %v947_v48 = vadd.f32 %v940_v47, %v772_v43  ;;  %v942_v49 = vpop.f32.mrb[21].mxu0  ;;  %v3503_v47 = vld [vmem:[%s4582_s4 + $0x48] sm:$0xff]  }
 0x2dd   :  { %v943_v50 = vpop.f32.mrb[22].mxu0  ;;  %v3505_v49 = vld [vmem:[%s4582_s4 + $0x50] sm:$0xff]  }
 0x2de   :  { %v948_v51 = vadd.f32 %v943_v50, %v773_v3  ;;  %v945_v52 = vpop.f32.mrb[23].mxu0  ;;  %v3501_v3 = vld [vmem:[%s4582_s4 + $0x40] sm:$0xff]   ;;  %v3506_v50 = vld [vmem:[%s4582_s4 + $0x10] sm:$0xff]  }
 0x2df   :  { %v3508_v52 = vld [vmem:[%s4582_s4 + $0x18] sm:$0xff]  }
 0x2eb   :  { %v994_v53 = vpop.f32.mrb[16].mxu1 }
 0x2ec   :  { %v996_v54 = vpop.f32.mrb[17].mxu1 }
 0x2ed   :  { %v998_v32 = vpop.f32.mrb[18].mxu1 }
 0x2ee   :  { %v1003_v55 = vpack.c.bf16 %v998_v32, %v994_v53  ;;  %v1000_v56 = vpop.f32.mrb[19].mxu1  ;;  %v3509_v53 = vld [vmem:[%s4582_s4 + $0x60] sm:$0xff]   ;;  %v3511_v32 = vld [vmem:[%s4582_s4 + $0x68] sm:$0xff]  }
 0x2ef   :  { %v1004_v57 = vpack.c.bf16 %v1000_v56, %v996_v54  ;;  %v1169_v37 = vpop.f32.mrb[24].mxu0  ;;  %v3510_v54 = vld [vmem:[%s4582_s4 + $0x20] sm:$0xff]   ;;  %v3513_v56 = vld [vmem:[%s4582_s4 + $0x70] sm:$0xff]  }
 0x2f0   :  { %v1171_v58 = vpop.f32.mrb[25].mxu0 }
 0x2f1   :  { %2982 = vmatprep.mubr.msk.bf16.mxu1 %vm281_vm2, %v1004_v57  ;;  %v1173_v59 = vpop.f32.mrb[26].mxu0  ;;  %v3514_v57 = vld [vmem:[%s4582_s4 + $0x30] sm:$0xff]  }
 0x2f2   :  { %v1178_v60 = vpack.c.bf16 %v1173_v59, %v1169_v37  ;;  %1114 = vmatmul.mubr.bf16.vlgmr.msra.gmra.mrb[20].mxu1 %v1003_v55  ;;  %v1175_v61 = vpop.f32.mrb[27].mxu0  ;;  %v3512_v55 = vld [vmem:[%s4582_s4 + $0x28] sm:$0xff]   ;;  %v3515_v37 = vld [vmem:[%s4582_s4 + $0x78] sm:$0xff]  }
 0x2f3   :  { %v1179_v62 = vpack.c.bf16 %v1175_v61, %v1171_v58  ;;  %1311 = vmatpush1.bf16.msra.mxu1 %v3718_v8  ;;  %1342 = vmatprep.mubr.bf16.mxu1 %v3627_v7  ;;  %v3491_v8 = vld [vmem:[%s4580_s2 + $0x38] sm:$0xff]  }
 0x2f4   :  { %1312 = vmatprep.subr.bf16.mxu1 %v3720_v9  ;;  %v3492_v9 = vld [vmem:[%s4579_s1 + $0x1f8] sm:$0xff]  }
 0x2f5   :  { %3015 = vmatprep.mubr.msk.bf16.mxu0 %vm281_vm2, %v1179_v62  ;;  %v3516_v58 = vld [vmem:[%s4582_s4 + $0x38] sm:$0xff]  }
 0x2f6   :  { %1289 = vmatmul.mubr.bf16.vlgmr.msra.gmra.mrb[28].mxu0 %v1178_v60 }
 0x2f7   :  { %1313 = vmatpush1.bf16.msra.mxu1 %v3738_v14  ;;  %v3493_v14 = vld [vmem:[%s4579_s1 + $0x200] sm:$0xff]   ;;  %3303 = vmatprep.mubr.msk.bf16.mxu0 %vm3629_vm3, %v3628_v28 }
 0x2f8   :  { %1314 = vmatprep.subr.bf16.mxu1 %v3742_v15  ;;  %v3494_v15 = vld [vmem:[%s4579_s1 + $0x208] sm:$0xff]  }
 0x2fb   :  { %1315 = vmatpush1.bf16.msra.mxu1 %v3761_v21  ;;  %v3495_v21 = vld [vmem:[%s4579_s1 + $0x210] sm:$0xff]  }
 0x2fc   :  { %1316 = vmatprep.subr.bf16.mxu1 %v3768_v23  ;;  %v3496_v23 = vld [vmem:[%s4579_s1 + $0x218] sm:$0xff]  }
 0x2ff   :  { %1317 = vmatpush1.bf16.msra.mxu1 %v3778_v26  ;;  %v3497_v26 = vld [vmem:[%s4579_s1 + $0x220] sm:$0xff]  }
 0x300   :  { %3019 = vmatprep.subr.msk.bf16.mxu1 %vm82_vm0, %v3782_v27  ;;  %v3498_v27 = vld [vmem:[%s4579_s1 + $0x228] sm:$0xff]  }
 0x303   :  { %1319 = vmatpush1.bf16.msra.mxu1 %v3791_v29  ;;  %v3499_v29 = vld [vmem:[%s4579_s1 + $0x230] sm:$0xff]  }
 0x304   :  { %1431 = vmatprep.subr.bf16.mxu1 %v3627_v7 }
 0x306   :  { %3020 = vmatmul.mubr.msk.bf16.vlgmr.msra.gmra.mrb[24].mxu1 %vm78_vm1, %v3491_v8 }
 0x307   :  { %1432 = vmatpush1.bf16.msra.mxu1 %v3492_v9 }
 0x308   :  { %1433 = vmatprep.subr.bf16.mxu1 %v3627_v7 }
 0x30b   :  { %1434 = vmatpush1.bf16.msra.mxu1 %v3493_v14 }
 0x30c   :  { %1435 = vmatprep.subr.bf16.mxu1 %v3627_v7 }
 0x30f   :  { %1436 = vmatpush1.bf16.msra.mxu1 %v3494_v15 }
 0x310   :  { %1437 = vmatprep.subr.bf16.mxu1 %v3627_v7 }
 0x313   :  { %1438 = vmatpush1.bf16.msra.mxu1 %v3495_v21 }
 0x314   :  { %1439 = vmatprep.subr.bf16.mxu1 %v3627_v7 }
 0x317   :  { %1440 = vmatpush1.bf16.msra.mxu1 %v3496_v23 }
 0x318   :  { %1441 = vmatprep.subr.bf16.mxu1 %v3627_v7 }
 0x31b   :  { %1442 = vmatpush1.bf16.msra.mxu1 %v3497_v26  ;;  %v3085_v26 = vld [vmem:[%s4583_s5 + $0x8] sm:$0x7] }
 0x31c   :  { %1443 = vmatprep.subr.bf16.mxu1 %v3627_v7 }
 0x31f   :  { %1444 = vmatpush1.bf16.msra.mxu1 %v3498_v27  ;;  %v3111_v27 = vld [vmem:[%s4583_s5 + $0xc] sm:$0x7] }
 0x320   :  { %1445 = vmatprep.subr.bf16.mxu1 %v3627_v7 }
 0x323   :  { %1446 = vmatpush1.bf16.msra.mxu1 %v3499_v29  ;;  %v3517_v29 = vld [vmem:[%s4582_s4 + $0x80] sm:$0xff]  }
 0x324   :  { %1447 = vmatprep.subr.bf16.mxu1 %v3627_v7 }
 0x327   :  { %1448 = vmatpush1.bf16.msra.mxu1 %v3500_v63  ;;  %v3518_v63 = vld [vmem:[%s4582_s4 + $0xc0] sm:$0xff]  }
 0x328   :  { %3295 = vmatprep.subr.bf16.mxu1 %v3628_v28 }
 0x3c5   :  { %v1115_v0 = vpop.f32.mrb[20].mxu1 }
 0x3c6   :  { %v1122_v1 = vadd.f32 %v1115_v0, %v947_v48  ;;  %v1117_v2 = vpop.f32.mrb[21].mxu1  ;;  %v3504_v48 = vld [vmem:[%s4582_s4 + $0x8] sm:$0xff]  }
 0x3c7   :  { %v1118_v4 = vpop.f32.mrb[22].mxu1  ;;  %v3519_v0 = vld [vmem:[%s4582_s4 + $0x88] sm:$0xff]   ;;  %v3521_v2 = vld [vmem:[%s4582_s4 + $0x90] sm:$0xff]  }
 0x3c8   :  { %v1123_v5 = vadd.f32 %v1118_v4, %v948_v51  ;;  %v1120_v6 = vpop.f32.mrb[23].mxu1  ;;  %v3507_v51 = vld [vmem:[%s4582_s4 + $0x58] sm:$0xff]   ;;  %v3522_v4 = vld [vmem:[%s4582_s4 + $0xd0] sm:$0xff]  }
 0x3c9   :  { %v1290_v10 = vpop.f32.mrb[28].mxu0  ;;  %v3524_v6 = vld [vmem:[%s4582_s4 + $0xd8] sm:$0xff]  }
 0x3ca   :  { %v1297_v11 = vadd.f32 %v1290_v10, %v1122_v1  ;;  %v1292_v12 = vpop.f32.mrb[29].mxu0  ;;  %v3520_v1 = vld [vmem:[%s4582_s4 + $0xc8] sm:$0xff]   ;;  %v3525_v10 = vld [vmem:[%s4582_s4 + $0xa0] sm:$0xff]  }
 0x3cb   :  { %v1293_v13 = vpop.f32.mrb[30].mxu0  ;;  %v3527_v12 = vld [vmem:[%s4582_s4 + $0xa8] sm:$0xff]  }
 0x3cc   :  { %v1298_v16 = vadd.f32 %v1293_v13, %v1123_v5  ;;  %v1295_v17 = vpop.f32.mrb[31].mxu0  ;;  %v3523_v5 = vld [vmem:[%s4582_s4 + $0x98] sm:$0xff]   ;;  %v3528_v13 = vld [vmem:[%s4582_s4 + $0xe8] sm:$0xff]  }
 0x3cd   :  { %v3530_v17 = vld [vmem:[%s4582_s4 + $0xf0] sm:$0xff]  }
 0x3d9   :  { %v1344_v18 = vpop.f32.mrb[24].mxu1 }
 0x3da   :  { %v1346_v19 = vpop.f32.mrb[25].mxu1 }
 0x3db   :  { %v1348_v20 = vpop.f32.mrb[26].mxu1 }
 0x3dc   :  { %v1353_v22 = vpack.c.bf16 %v1348_v20, %v1344_v18  ;;  %v1350_v24 = vpop.f32.mrb[27].mxu1  ;;  %v3531_v18 = vld [vmem:[%s4582_s4 + $0xb8] sm:$0xff]  }
 0x3dd   :  { %v1354_v25 = vpack.c.bf16 %v1350_v24, %v1346_v19  ;;  %v3532_v19 = vld [vmem:[%s4582_s4 + $0xf8] sm:$0xff]  }
 0x3df   :  { %3048 = vmatprep.mubr.msk.bf16.mxu1 %vm281_vm2, %v1354_v25 }
 0x3e0   :  { %1464 = vmatmul.mubr.bf16.vlgmr.msra.gmra.mrb[28].mxu1 %v1353_v22 }
 0x3e1   :  { %3297 = vmatprep.mubr.msk.bf16.mxu1 %vm3629_vm3, %v3628_v28 }
 0x4b3   :  { %v1465_v30 = vpop.f32.mrb[28].mxu1 }
 0x4b4   :  { %v1472_v33 = vadd.f32 %v1465_v30, %v1297_v11  ;;  %v1467_v34 = vpop.f32.mrb[29].mxu1  ;;  %v3526_v11 = vld [vmem:[%s4582_s4 + $0xe0] sm:$0xff]  }
 0x4b5   :  { %v1468_v35 = vpop.f32.mrb[30].mxu1 }
 0x4b6   :  { %v1481_v36 = vadd.f32 %v3049_v31, %v1472_v33  ;;  %v1473_v38 = vadd.f32 %v1468_v35, %v1298_v16  ;;  %v1470_v39 = vpop.f32.mrb[31].mxu1  ;;  %v3529_v16 = vld [vmem:[%s4582_s4 + $0xb0] sm:$0xff]  }
 0x4b8   :  { %v1482_v40 = vadd.f32 %v3049_v31, %v1473_v38  ;;  %v1483_v41 = vmax.f32 %v1481_v36, 0.0 }
 0x4ba   :  { %v1484_v42 = vmax.f32 %v1482_v40, 0.0 }
 0x4bc   :  { %v4210_v43 = vpack.c.bf16 %v1484_v42, %v1483_v41 }
 0x4be   :  { %3296 = vmatpush3.bf16.msra.mxu1 %v4210_v43  ;;  %3302 = vmatpush3.bf16.msra.mxu0 %v4210_v43 }
 0x4bf   :  { %3307 = vmatprep.subr.bf16.mxu0 %v3628_v28  ;;  %3327 = vmatprep.subr.bf16.mxu1 %v3628_v28 }
 0x4c1   :  { %3298 = vmatmul.mubr.msk.bf16.vlgmr.msra.gmra.mrb[32].mxu1 %vm281_vm2, %v1486_v44  ;;  %3304 = vmatmul.mubr.msk.bf16.vlgmr.msra.gmra.mrb[32].mxu0 %vm281_vm2, %v3051_v45 }
 0x4c2   :  { %3308 = vmatpush3.bf16.msra.mxu0 %v3501_v3  ;;  %3328 = vmatpush3.bf16.msra.mxu1 %v3502_v46  ;;  %v3533_v46 = vld [vmem:[%s4585_s7] ss:$8 sps:$4 sm:$0xff]  }
 0x4c3   :  { %3309 = vmatprep.subr.bf16.mxu0 %v3628_v28  ;;  %3329 = vmatprep.subr.bf16.mxu1 %v3628_v28 }
 0x4c4   :  { %3323 = vmatprep.mubr.msk.bf16.mxu0 %vm3629_vm3, %v3628_v28  ;;  %3343 = vmatprep.mubr.msk.bf16.mxu1 %vm3629_vm3, %v3628_v28 }
 0x4c6   :  { %3310 = vmatpush3.bf16.msra.mxu0 %v3503_v47  ;;  %3330 = vmatpush3.bf16.msra.mxu1 %v3504_v48  ;;  %v3535_v47 = vld [vmem:[%s4585_s7 + $0x4] ss:$8 sps:$4 sm:$0xff]   ;;  %v3538_v48 = vld [vmem:[%s4585_s7 + $0x14] ss:$8 sps:$4 sm:$0xff]  }
 0x4c7   :  { %3311 = vmatprep.subr.bf16.mxu0 %v3628_v28  ;;  %3331 = vmatprep.subr.bf16.mxu1 %v3628_v28 }
 0x4ca   :  { %3312 = vmatpush3.bf16.msra.mxu0 %v3505_v49  ;;  %3332 = vmatpush3.bf16.msra.mxu1 %v3506_v50  ;;  %v3536_v49 = vld [vmem:[%s4585_s7 + $0x10] ss:$8 sps:$4 sm:$0xff]   ;;  %v3544_v50 = vld [vmem:[%s4585_s7 + $0x24] ss:$8 sps:$4 sm:$0xff]  }
 0x4cb   :  { %3313 = vmatprep.subr.bf16.mxu0 %v3628_v28  ;;  %3333 = vmatprep.subr.bf16.mxu1 %v3628_v28 }
 0x4ce   :  { %3314 = vmatpush3.bf16.msra.mxu0 %v3507_v51  ;;  %3334 = vmatpush3.bf16.msra.mxu1 %v3508_v52  ;;  %v3542_v51 = vld [vmem:[%s4585_s7 + $0x20] ss:$8 sps:$4 sm:$0xff]   ;;  %v3550_v52 = vld [vmem:[%s4585_s7 + $0x34] ss:$8 sps:$4 sm:$0xff]  }
 0x4cf   :  { %3315 = vmatprep.subr.bf16.mxu0 %v3628_v28  ;;  %3335 = vmatprep.subr.bf16.mxu1 %v3628_v28 }
 0x4d2   :  { %3316 = vmatpush3.bf16.msra.mxu0 %v3509_v53  ;;  %3336 = vmatpush3.bf16.msra.mxu1 %v3510_v54  ;;  %v3548_v53 = vld [vmem:[%s4585_s7 + $0x30] ss:$8 sps:$4 sm:$0xff]   ;;  %v3556_v54 = vld [vmem:[%s4585_s7 + $0x44] ss:$8 sps:$4 sm:$0xff]  }
 0x4d3   :  { %3317 = vmatprep.subr.bf16.mxu0 %v3628_v28  ;;  %3337 = vmatprep.subr.bf16.mxu1 %v3628_v28 }
 0x4d6   :  { %3318 = vmatpush3.bf16.msra.mxu0 %v3511_v32  ;;  %3338 = vmatpush3.bf16.msra.mxu1 %v3512_v55  ;;  %v3554_v32 = vld [vmem:[%s4585_s7 + $0x40] ss:$8 sps:$4 sm:$0xff]   ;;  %v3562_v55 = vld [vmem:[%s4585_s7 + $0x54] ss:$8 sps:$4 sm:$0xff]  }
 0x4d7   :  { %3319 = vmatprep.subr.bf16.mxu0 %v3628_v28  ;;  %3339 = vmatprep.subr.bf16.mxu1 %v3628_v28 }
 0x4da   :  { %3320 = vmatpush3.bf16.msra.mxu0 %v3513_v56  ;;  %3340 = vmatpush3.bf16.msra.mxu1 %v3514_v57  ;;  %v3560_v56 = vld [vmem:[%s4585_s7 + $0x50] ss:$8 sps:$4 sm:$0xff]  }
 0x4db   :  { %3321 = vmatprep.subr.bf16.mxu0 %v3628_v28  ;;  %3341 = vmatprep.subr.bf16.mxu1 %v3628_v28 }
 0x4de   :  { %3322 = vmatpush3.bf16.msra.mxu0 %v3515_v37  ;;  %3342 = vmatpush3.bf16.msra.mxu1 %v3516_v58 }
 0x4df   :  { %3347 = vmatprep.subr.bf16.mxu0 %v3628_v28  ;;  %3373 = vmatprep.subr.bf16.mxu1 %v3628_v28 }
 0x594   :  { %v1524_v59 = vpop.f32.mrb[32].mxu1  ;;  %v1586_v60 = vpop.f32.mrb[32].mxu0 }
 0x595   :  { %v1530_v61 = vpack.c.bf16 %v1524_v59, %v1524_v59  ;;  %v1592_v62 = vpack.c.bf16 %v1586_v60, %v1586_v60  ;;  %v3299_v8 = vpop.f32.mrb[33].mxu1  ;;  %v3305_v9 = vpop.f32.mrb[33].mxu0 }
 0x596   :  { %v1527_v14 = vpop.f32.mrb[34].mxu1  ;;  %v1589_v15 = vpop.f32.mrb[34].mxu0 }
 0x597   :  { %v3300_v21 = vpop.f32.mrb[35].mxu1  ;;  %v3306_v23 = vpop.f32.mrb[35].mxu0  ;;  %3324 = vmatmul.mubr.bf16.vlgmr.msra.gmra.mrb[36].mxu0 %v1592_v62  ;;  %3344 = vmatmul.mubr.bf16.vlgmr.msra.gmra.mrb[36].mxu1 %v1530_v61  ;;  %v3137_v61 = vld [vmem:[%s4584_s6] ss:$0 sm:$0xff] }
 0x598   :  { %3348 = vmatpush3.bf16.msra.mxu0 %v4210_v43  ;;  %3374 = vmatpush3.bf16.msra.mxu1 %v4210_v43 }
 0x599   :  { %3349 = vmatprep.mubr.msk.bf16.mxu0 %vm3629_vm3, %v3628_v28  ;;  %3375 = vmatprep.mubr.msk.bf16.mxu1 %vm3629_vm3, %v3628_v28 }
 0x59a   :  { %3353 = vmatprep.subr.bf16.mxu0 %v3628_v28  ;;  %3379 = vmatprep.subr.bf16.mxu1 %v3628_v28 }
 0x59f   :  { %3350 = vmatmul.mubr.msk.bf16.vlgmr.msra.gmra.mrb[40].mxu0 %vm281_vm2, %v3085_v26  ;;  %3376 = vmatmul.mubr.msk.bf16.vlgmr.msra.gmra.mrb[40].mxu1 %vm281_vm2, %v3111_v27 }
 0x5a0   :  { %3354 = vmatpush3.bf16.msra.mxu0 %v3517_v29  ;;  %3380 = vmatpush3.bf16.msra.mxu1 %v3518_v63  ;;  %v2100_v29 = vld [vmem:[%s4586_s8] sm:$0x1]  ;;  %v3541_v63 = vld [vmem:[%s4585_s7 + $0x64] ss:$8 sps:$4 sm:$0xff]  }
 0x5a1   :  { %3355 = vmatprep.subr.bf16.mxu0 %v3628_v28  ;;  %3381 = vmatprep.subr.bf16.mxu1 %v3628_v28 }
 0x5a2   :  { %3369 = vmatprep.mubr.msk.bf16.mxu0 %vm3629_vm3, %v3628_v28  ;;  %3395 = vmatprep.mubr.msk.bf16.mxu1 %vm3629_vm3, %v3628_v28 }
 0x5a4   :  { %3356 = vmatpush3.bf16.msra.mxu0 %v3519_v0  ;;  %3382 = vmatpush3.bf16.msra.mxu1 %v3520_v1  ;;  %v3139_v0 = vld [vmem:[%s4586_s8 + $0x1] sm:$0x1] }
 0x5a5   :  { %3357 = vmatprep.subr.bf16.mxu0 %v3628_v28  ;;  %3383 = vmatprep.subr.bf16.mxu1 %v3628_v28  ;;  %v3539_v1 = vld [vmem:[%s4585_s7 + $0x60] ss:$8 sps:$4 sm:$0xff]  }
 0x5a8   :  { %3358 = vmatpush3.bf16.msra.mxu0 %v3521_v2  ;;  %3384 = vmatpush3.bf16.msra.mxu1 %v3522_v4  ;;  %v3547_v2 = vld [vmem:[%s4585_s7 + $0x74] ss:$8 sps:$4 sm:$0xff]   ;;  %v3545_v4 = vld [vmem:[%s4585_s7 + $0x70] ss:$8 sps:$4 sm:$0xff]  }
 0x5a9   :  { %3359 = vmatprep.subr.bf16.mxu0 %v3628_v28  ;;  %3385 = vmatprep.subr.bf16.mxu1 %v3628_v28 }
 0x5ac   :  { %3360 = vmatpush3.bf16.msra.mxu0 %v3523_v5  ;;  %3386 = vmatpush3.bf16.msra.mxu1 %v3524_v6  ;;  %v3553_v5 = vld [vmem:[%s4585_s7 + $0x84] ss:$8 sps:$4 sm:$0xff]   ;;  %v3551_v6 = vld [vmem:[%s4585_s7 + $0x80] ss:$8 sps:$4 sm:$0xff]  }
 0x5ad   :  { %3361 = vmatprep.subr.bf16.mxu0 %v3628_v28  ;;  %3387 = vmatprep.subr.bf16.mxu1 %v3628_v28 }
 0x5b0   :  { %3362 = vmatpush3.bf16.msra.mxu0 %v3525_v10  ;;  %3388 = vmatpush3.bf16.msra.mxu1 %v3526_v11  ;;  %v3559_v10 = vld [vmem:[%s4585_s7 + $0x94] ss:$8 sps:$4 sm:$0xff]   ;;  %v3557_v11 = vld [vmem:[%s4585_s7 + $0x90] ss:$8 sps:$4 sm:$0xff]  }
 0x5b1   :  { %3363 = vmatprep.subr.bf16.mxu0 %v3628_v28  ;;  %3389 = vmatprep.subr.bf16.mxu1 %v3628_v28 }
 0x5b4   :  { %3364 = vmatpush3.bf16.msra.mxu0 %v3527_v12  ;;  %3390 = vmatpush3.bf16.msra.mxu1 %v3528_v13  ;;  %v3563_v12 = vld [vmem:[%s4585_s7 + $0xa0] ss:$8 sps:$4 sm:$0xff]   ;;  %v3565_v13 = vld [vmem:[%s4585_s7 + $0xa4] ss:$8 sps:$4 sm:$0xff]  }
 0x5b5   :  { %3365 = vmatprep.subr.bf16.mxu0 %v3628_v28  ;;  %3391 = vmatprep.subr.bf16.mxu1 %v3628_v28 }
 0x5b8   :  { %3366 = vmatpush3.bf16.msra.mxu0 %v3529_v16  ;;  %3392 = vmatpush3.bf16.msra.mxu1 %v3530_v17  ;;  %v3568_v16 = vld [vmem:[%s4585_s7 + $0xb4] ss:$8 sps:$4 sm:$0xff]   ;;  %v3566_v17 = vld [vmem:[%s4585_s7 + $0xb0] ss:$8 sps:$4 sm:$0xff]  }
 0x5b9   :  { %3367 = vmatprep.subr.bf16.mxu0 %v3628_v28  ;;  %3393 = vmatprep.subr.bf16.mxu1 %v3628_v28 }
 0x5bc   :  { %3368 = vmatpush3.bf16.msra.mxu0 %v3531_v18  ;;  %3394 = vmatpush3.bf16.msra.mxu1 %v3532_v19  ;;  %v3571_v18 = vld [vmem:[%s4585_s7 + $0xc4] ss:$8 sps:$4 sm:$0xff]  }
 0x5bd   :  { %3399 = vmatprep.subr.bf16.mxu0 %v3628_v28  ;;  %2389 = vmatprep.subr.bf16.mxu1 %v3535_v47  ;;  %v3588_v47 = vld [vmem:[%s4588_s10] sm:$0xff]  }
 0x66a   :  { %v1692_v20 = vpop.f32.mrb[36].mxu0  ;;  %v1780_v22 = vpop.f32.mrb[36].mxu1 }
 0x66b   :  { %v1781_v24 = vadd.f32 %v1780_v22, %v1692_v20  ;;  %v3325_v25 = vpop.f32.mrb[37].mxu0  ;;  %v3345_v30 = vpop.f32.mrb[37].mxu1  ;;  %v3569_v20 = vld [vmem:[%s4585_s7 + $0xc0] ss:$8 sps:$4 sm:$0xff]  }
 0x66c   :  { %v1695_v31 = vpop.f32.mrb[38].mxu0  ;;  %v1783_v33 = vpop.f32.mrb[38].mxu1  ;;  %v3574_v25 = vld [vmem:[%s4585_s7 + $0xd4] ss:$8 sps:$4 sm:$0xff]  }
 0x66d   :  { %v3326_v34 = vpop.f32.mrb[39].mxu0  ;;  %v3346_v35 = vpop.f32.mrb[39].mxu1  ;;  %v3572_v33 = vld [vmem:[%s4585_s7 + $0xd0] ss:$8 sps:$4 sm:$0xff]  }
 0x672   :  { %v1825_v36 = vpop.f32.mrb[40].mxu0  ;;  %v1977_v38 = vpop.f32.mrb[40].mxu1 }
 0x673   :  { %v1831_v39 = vpack.c.bf16 %v1825_v36, %v1825_v36  ;;  %v1983_v40 = vpack.c.bf16 %v1977_v38, %v1977_v38  ;;  %v3351_v41 = vpop.f32.mrb[41].mxu0  ;;  %v3377_v42 = vpop.f32.mrb[41].mxu1 }
 0x674   :  { %v1828_v43 = vpop.f32.mrb[42].mxu0  ;;  %v1980_v44 = vpop.f32.mrb[42].mxu1  ;;  %v3577_v41 = vld [vmem:[%s4585_s7 + $0xe4] ss:$8 sps:$4 sm:$0xff]   ;;  %v3580_v42 = vld [vmem:[%s4585_s7 + $0xf4] ss:$8 sps:$4 sm:$0xff]  }
 0x675   :  { %v3352_v45 = vpop.f32.mrb[43].mxu0  ;;  %3370 = vmatmul.mubr.bf16.vlgmr.msra.gmra.mrb[44].mxu0 %v1831_v39  ;;  %v3378_v3 = vpop.f32.mrb[43].mxu1  ;;  %3396 = vmatmul.mubr.bf16.vlgmr.msra.gmra.mrb[44].mxu1 %v1983_v40  ;;  %v3179_v40 = vld [vmem:[%s4586_s8 + $0x2] sm:$0x1]  ;;  %v3583_v44 = vld [vmem:[%s4585_s7 + $0x104] ss:$8 sps:$4 sm:$0xff]  }
 0x676   :  { %3401 = vmatprep.mubr.msk.bf16.mxu0 %vm3629_vm3, %v3628_v28  ;;  %2421 = vmatprep.mubr.bf16.mxu1 %v3627_v7  ;;  %v3581_v43 = vld [vmem:[%s4585_s7 + $0x100] ss:$8 sps:$4 sm:$0xff]   ;;  %v3586_v45 = vld [vmem:[%s4585_s7 + $0x114] ss:$8 sps:$4 sm:$0xff]   ;;  %v3584_v3 = vld [vmem:[%s4585_s7 + $0x110] ss:$8 sps:$4 sm:$0xff]  }
 0x677   :  { %2390 = vmatpush1.bf16.msra.mxu1 %v3533_v46  ;;  %v3587_v46 = vld [vmem:[%s4588_s10 + $0x40] sm:$0xff]  }
 0x678   :  { %2391 = vmatprep.subr.bf16.mxu1 %v3538_v48  ;;  %v3589_v48 = vld [vmem:[%s4588_s10 + $0x48] sm:$0xff]  }
 0x67b   :  { %2392 = vmatpush1.bf16.msra.mxu1 %v3536_v49  ;;  %v3590_v49 = vld [vmem:[%s4588_s10 + $0x8] sm:$0xff]  }
 0x67c   :  { %2393 = vmatprep.subr.bf16.mxu1 %v3544_v50  ;;  %v3591_v50 = vld [vmem:[%s4588_s10 + $0x50] sm:$0xff]  }
 0x67f   :  { %2394 = vmatpush1.bf16.msra.mxu1 %v3542_v51  ;;  %v3592_v51 = vld [vmem:[%s4588_s10 + $0x10] sm:$0xff]  }
 0x680   :  { %2395 = vmatprep.subr.bf16.mxu1 %v3550_v52  ;;  %v3593_v52 = vld [vmem:[%s4588_s10 + $0x58] sm:$0xff]  }
 0x683   :  { %2396 = vmatpush1.bf16.msra.mxu1 %v3548_v53  ;;  %v3594_v53 = vld [vmem:[%s4588_s10 + $0x18] sm:$0xff]  }
 0x684   :  { %2397 = vmatprep.subr.bf16.mxu1 %v3556_v54  ;;  %v3595_v54 = vld [vmem:[%s4588_s10 + $0x60] sm:$0xff]  }
 0x687   :  { %2398 = vmatpush1.bf16.msra.mxu1 %v3554_v32  ;;  %v3596_v32 = vld [vmem:[%s4588_s10 + $0x20] sm:$0xff]  }
 0x688   :  { %2399 = vmatprep.subr.bf16.mxu1 %v3562_v55  ;;  %v3597_v55 = vld [vmem:[%s4588_s10 + $0x68] sm:$0xff]  }
 0x68b   :  { %2400 = vmatpush1.bf16.msra.mxu1 %v3560_v56 }
 0x68c   :  { %2552 = vmatprep.subr.bf16.mxu1 %v3571_v18 }
 0x748   :  { %v1931_v57 = vpop.f32.mrb[44].mxu0  ;;  %v2083_v37 = vpop.f32.mrb[44].mxu1 }
 0x749   :  { %v1937_v58 = vadd.f32 %v1931_v57, %v1781_v24  ;;  %v3371_v59 = vpop.f32.mrb[45].mxu0  ;;  %v3397_v60 = vpop.f32.mrb[45].mxu1 }
 0x74a   :  { %v1934_v62 = vpop.f32.mrb[46].mxu0  ;;  %v2086_v8 = vpop.f32.mrb[46].mxu1 }
 0x74b   :  { %v2089_v9 = vadd.f32 %v2083_v37, %v1937_v58  ;;  %v3372_v14 = vpop.f32.mrb[47].mxu0  ;;  %v3398_v15 = vpop.f32.mrb[47].mxu1 }
 0x74d   :  { %v2097_v21 = vadd.f32 %v3137_v61, %v2089_v9 }
 0x74f   :  { %v2098_v23 = vmax.f32 %v2097_v21, 0.0 }
 0x751   :  { %v2099_v26 = vpack.c.bf16 %v2098_v23, %v2098_v23 }
 0x753   :  { %v2107_v27 = vsel %vm2105_vm4, %v2099_v26, 0 }
 0x754   :  { %3400 = vmatpush3.bf16.msra.mxu0 %v2107_v27 }
 0x755   :  { %3405 = vmatprep.subr.bf16.mxu0 %v3628_v28 }
 0x757   :  { %3402 = vmatmul.mubr.msk.bf16.vlgmr.msra.gmra.mrb[48].mxu0 %vm2101_vm5, %v2100_v29  ;;  %v3599_v29 = vld [vmem:[%s4588_s10 + $0x70] sm:$0xff]  }
 0x758   :  { %3406 = vmatpush3.bf16.msra.mxu0 %v2107_v27  ;;  %3407 = vmatprep.mubr.msk.bf16.mxu0 %vm3629_vm3, %v3628_v28 }
 0x759   :  { %2285 = vmatprep.subr.bf16.mxu0 %v3541_v63  ;;  %v3600_v63 = vld [vmem:[%s4588_s10 + $0x30] sm:$0xff]  }
 0x75f   :  { %3408 = vmatmul.mubr.msk.bf16.vlgmr.msra.gmra.mrb[52].mxu0 %vm2101_vm5, %v3139_v0  ;;  %v3601_v0 = vld [vmem:[%s4588_s10 + $0x78] sm:$0xff]  }
 0x760   :  { %2286 = vmatpush1.bf16.msra.mxu0 %v3539_v1  ;;  %2317 = vmatprep.mubr.bf16.mxu0 %v3627_v7  ;;  %v3602_v1 = vld [vmem:[%s4588_s10 + $0x38] sm:$0xff]  }
 0x761   :  { %2287 = vmatprep.subr.bf16.mxu0 %v3547_v2  ;;  %v2597_v2 = vlaneseq }
 0x764   :  { %2288 = vmatpush1.bf16.msra.mxu0 %v3545_v4  ;;  %v2598_v4 = vshrl.u32 %v2597_v2, 7 }
 0x765   :  { %2289 = vmatprep.subr.bf16.mxu0 %v3553_v5 }
 0x766   :  { %v2599_v5 = vsub.s32 0, %v2598_v4 }
 0x768   :  { %2290 = vmatpush1.bf16.msra.mxu0 %v3551_v6  ;;  %v2595_v6 = vld [vmem:[%s4587_s9] sm:$0x3] }
 0x769   :  { %2291 = vmatprep.subr.bf16.mxu0 %v3559_v10  ;;  %v2603_v10 = vsub.s32 1, %v2598_v4 }
 0x76c   :  { %2292 = vmatpush1.bf16.msra.mxu0 %v3557_v11  ;;  %v2600_v11 = vrot.slane %v2595_v6, %v2599_v5 }
 0x76d   :  { %2293 = vmatprep.subr.bf16.mxu0 %v3565_v13  ;;  %v2604_v13 = vrot.slane %v2595_v6, %v2603_v10 }
 0x770   :  { %2294 = vmatpush1.bf16.msra.mxu0 %v3563_v12 }
 0x771   :  { %2295 = vmatprep.subr.bf16.mxu0 %v3568_v16 }
 0x774   :  { %2296 = vmatpush1.bf16.msra.mxu0 %v3566_v17 }
 0x775   :  { %3411 = vmatprep.subr.bf16.mxu0 %v3628_v28 }
 0x82a   :  { %v2143_v19 = vpop.f32.mrb[48].mxu0 }
 0x82b   :  { %v2149_v22 = vpack.c.bf16 %v2143_v19, %v2143_v19  ;;  %v3403_v24 = vpop.f32.mrb[49].mxu0 }
 0x82c   :  { %v2146_v30 = vpop.f32.mrb[50].mxu0 }
 0x82d   :  { %v3404_v31 = vpop.f32.mrb[51].mxu0  ;;  %3178 = vmatmul.mubr.msk.bf16.vlgmr.msra.gmra.mrb[48].mxu1 %vm2281_vm6, %v2149_v22 }
 0x82e   :  { %2553 = vmatpush1.bf16.msra.mxu1 %v3569_v20  ;;  %2584 = vmatprep.mubr.bf16.mxu1 %v3627_v7  ;;  %v3575_v7 = vld [vmem:[%s4585_s7 + $0xe0] ss:$8 sps:$4 sm:$0xff]  }
 0x82f   :  { %2554 = vmatprep.subr.bf16.mxu1 %v3574_v25 }
 0x832   :  { %v2201_v34 = vpop.f32.mrb[52].mxu0  ;;  %2555 = vmatpush1.bf16.msra.mxu1 %v3572_v33 }
 0x833   :  { %v2207_v35 = vpack.c.bf16 %v2201_v34, %v2201_v34  ;;  %v3409_v36 = vpop.f32.mrb[53].mxu0  ;;  %2556 = vmatprep.subr.bf16.mxu1 %v3577_v41 }
 0x834   :  { %v2204_v38 = vpop.f32.mrb[54].mxu0 }
 0x835   :  { %3165 = vmatmul.mubr.msk.bf16.vlgmr.msra.gmra.mrb[56].mxu0 %vm2281_vm6, %v2207_v35  ;;  %v3410_v39 = vpop.f32.mrb[55].mxu0  ;;  %v3206_v35 = vld [vmem:[%s4589_s11] ss:$0 sm:$0xff] }
 0x836   :  { %3412 = vmatpush3.bf16.msra.mxu0 %v2107_v27  ;;  %3413 = vmatprep.mubr.msk.bf16.mxu0 %vm3629_vm3, %v3628_v28  ;;  %v3578_v28 = vld [vmem:[%s4585_s7 + $0xf0] ss:$8 sps:$4 sm:$0xff]   ;;  %v3598_v27 = vld [vmem:[%s4588_s10 + $0x28] sm:$0xff]   ;;  %s2797_s7 = sshll.u32 %s3630_s21, 4  ;;  %s2798_s7 = int_to_ptr.vmem [resolvable:$true] %s2797_s7 }
 0x837   :  { %2557 = vmatpush1.bf16.msra.mxu1 %v3575_v7  ;;  %3273 = vmatprep.subr.bf16.mxu0 %v3587_v46  ;;  %s3603_s22 = scalar_lea.vmem %s2798_s7, 32  ;;  %p3608_p1 = scmp.lt.s32.totalorder %s2798_s7, %s2798_s7 }
 0x838   :  { %2558 = vmatprep.subr.bf16.mxu1 %v3580_v42  ;;  %p3604_p0 = scmp.ne.s32.totalorder %s2798_s7, %s3603_s22  ;;  %p3609_p2 = scmp.lt.s32.totalorder %s3603_s22, %s3603_s22 }
 0x83a   :  { %p3610_p3 = por %p3609_p2, %p3608_p1 }
 0x83b   :  { %2559 = vmatpush1.bf16.msra.mxu1 %v3578_v28 }
 0x83c   :  { %2560 = vmatprep.subr.bf16.mxu1 %v3583_v44  ;;  %p3611_p4 = pnand %p3610_p3, %p3604_p0 }
 0x83d   :  { %3414 = vmatmul.mubr.msk.bf16.vlgmr.msra.gmra.mrb[60].mxu0 %vm2101_vm5, %v3179_v40 }
 0x83e   :  { %3274 = vmatpush3.bf16.msra.mxu0 %v3588_v47 }
 0x83f   :  { %2561 = vmatpush1.bf16.msra.mxu1 %v3581_v43  ;;  %3275 = vmatprep.subr.bf16.mxu0 %v3589_v48 }
 0x840   :  { %2562 = vmatprep.subr.bf16.mxu1 %v3586_v45 }
 0x842   :  { %3276 = vmatpush3.bf16.msra.mxu0 %v3590_v49 }
 0x843   :  { %2563 = vmatpush1.bf16.msra.mxu1 %v3584_v3  ;;  %3277 = vmatprep.subr.bf16.mxu0 %v3591_v50 }
 0x846   :  { %3278 = vmatpush3.bf16.msra.mxu0 %v3592_v51 }
 0x847   :  { %3279 = vmatprep.subr.bf16.mxu0 %v3593_v52 }
 0x84a   :  { %3280 = vmatpush3.bf16.msra.mxu0 %v3594_v53 }
 0x84b   :  { %3281 = vmatprep.subr.bf16.mxu0 %v3595_v54 }
 0x84e   :  { %3282 = vmatpush3.bf16.msra.mxu0 %v3596_v32 }
 0x84f   :  { %3283 = vmatprep.subr.bf16.mxu0 %v3597_v55 }
 0x852   :  { %3284 = vmatpush3.bf16.msra.mxu0 %v3598_v27 }
 0x853   :  { %3285 = vmatprep.subr.bf16.mxu0 %v3599_v29 }
 0x856   :  { %3286 = vmatpush3.bf16.msra.mxu0 %v3600_v63 }
 0x857   :  { %3287 = vmatprep.subr.bf16.mxu0 %v3601_v0 }
 0x85a   :  { %3288 = vmatpush3.bf16.msra.mxu0 %v3602_v1 }
 0x900   :  { %v2423_v56 = vpop.f32.mrb[48].mxu1 }
 0x901   :  { %v2425_v57 = vpop.f32.mrb[49].mxu1 }
 0x902   :  { %v2427_v37 = vpop.f32.mrb[50].mxu1 }
 0x903   :  { %v2428_v58 = vpop.f32.mrb[51].mxu1 }
 0x908   :  { %v2319_v59 = vpop.f32.mrb[56].mxu0 }
 0x909   :  { %v2424_v60 = vadd.f32 %v2423_v56, %v2319_v59  ;;  %v2321_v61 = vpop.f32.mrb[57].mxu0 }
 0x90a   :  { %v2426_v62 = vadd.f32 %v2425_v57, %v2321_v61  ;;  %v2323_v8 = vpop.f32.mrb[58].mxu0 }
 0x90b   :  { %v2324_v9 = vpop.f32.mrb[59].mxu0 }
 0x910   :  { %v2469_v14 = vpop.f32.mrb[60].mxu0 }
 0x911   :  { %v2475_v15 = vpack.c.bf16 %v2469_v14, %v2469_v14  ;;  %v3415_v21 = vpop.f32.mrb[61].mxu0 }
 0x912   :  { %v2472_v23 = vpop.f32.mrb[62].mxu0 }
 0x913   :  { %3205 = vmatmul.mubr.msk.bf16.vlgmr.msra.gmra.mrb[52].mxu1 %vm2281_vm6, %v2475_v15  ;;  %v3416_v26 = vpop.f32.mrb[63].mxu0 }
 0x9e6   :  { %v2586_v12 = vpop.f32.mrb[52].mxu1 }
 0x9e7   :  { %v2593_v16 = vadd.f32 %v2586_v12, %v2424_v60  ;;  %v2588_v17 = vpop.f32.mrb[53].mxu1 }
 0x9e8   :  { %v2594_v18 = vadd.f32 %v2588_v17, %v2426_v62  ;;  %v2590_v19 = vpop.f32.mrb[54].mxu1 }
 0x9e9   :  { %v2607_v20 = vadd.f32 %v2600_v11, %v2593_v16  ;;  %v2591_v22 = vpop.f32.mrb[55].mxu1 }
 0x9ea   :  { %v2608_v24 = vadd.f32 %v2604_v13, %v2594_v18 }
 0x9eb   :  { %v2609_v25 = vmax.f32 %v2607_v20, 0.0 }
 0x9ec   :  { %v2610_v30 = vmax.f32 %v2608_v24, 0.0 }
 0x9ed   :  { %v2611_v33 = vpack.c.bf16 %v2609_v25, %v2609_v25 }
 0x9ee   :  { %v2612_v31 = vpack.c.bf16 %v2610_v30, %v2610_v30 }
 0x9f0   :  { %2780 = vmatprep.mubr.bf16.mxu0 %v2612_v31 }
 0x9f1   :  { %2781 = vmatmul.mubr.bf16.vlgmr.msra.gmra.mrb[64].mxu0 %v2611_v33 }
 0xac4   :  { %v3289_v34 = vpop.f32.mrb[64].mxu0 }
 0xac5   :  { %v3290_v36 = vpop.f32.mrb[65].mxu0 }
 0xac6   :  { %v3291_v38 = vadd.f32 %v3290_v36, %v3289_v34  ;;  %v3292_v39 = vpop.f32.mrb[66].mxu0 }
 0xac7   :  { %v3293_v40 = vpop.f32.mrb[67].mxu0 }
 0xac8   :  { %v2783_v7 = vadd.f32 %v3291_v38, %v3206_v35 }
 0xaca   :  { %v2788_v41 = vmax.f32 %v2783_v7, 0.0 }
 0xacc   :  { %2790 = vst.msk [vmem:[#allocation2] sm:$0x3] %vm2789_vm7, %v2788_v41 }
 0xacd   :  { %3614 = shalt.err (!%p3611_p4)
}
 0xace   :  { %s3615_s24 = scalar_lea.hbm %s4590_s12, 32 }
 0xacf   :  { %p3616_p5 = scmp.ne.s32.totalorder %s4590_s12, %s3615_s24  ;;  %p3619_p6 = scmp.lt.u32.totalorder %s3615_s24, %s4590_s12 }
 0xad1   :  { %p3621_p7 = pnand %p3619_p6, %p3616_p5 }
 0xad3   :  { %3624 = shalt.err (!%p3621_p7)
}
 0xad4   :  { %2800 = dma.vmem_to_hbm [thread:$0]  %s2798_s7, 32, %s4590_s12, [#allocation3]  }
 0xad5   :  { %3625 = dma.done.wait [#allocation3], 32  }
 0xad6   :  { %3626 = vsyncadd [#allocation3], 4294967264 }
 0xad7   :  { %2804 = vsyncpa [#allocation3], 1 }

</bundles_post_ra>
